<compile_context>
chip_gen: v7x
topology: tpu7x:2x2x1
jax: 0.10.0
libtpu: 0.0.40
codegen_flags: <defaults>
</compile_context>

<pallas_src>
import jax
import jax.numpy as jnp
from jax import lax
from jax.experimental import pallas as pl
from jax.experimental.pallas import tpu as pltpu

CONFIG = dict(
    dim=4,              # input channels of the stream (MultiStageModel `dim`)
    num_classes=6,
    num_f_maps=32,
    dil=[1, 2, 4, 1, 2, 4, 1, 2, 4, 1],   # 10 entries (stream uses dil[0..9])
    num_layers_R=3,
    num_R=3,
    V=8,                # graph nodes
    K=3,                # spatial kernel size (A.shape[0])
    T=16,
    N=2,
    M=1,
)


# ----------------------------- fused megakernel ----------------------------- #

def _make_msgcn_kernel(n_stream_layers, n_stage_layers, n_stages, use_mavg):
    """Builds the single fused kernel. All loop extents / flags are static (closure)."""

    def mm(a, b):
        # bf16 MXU inputs, f32 accumulation.
        return jnp.dot(a.astype(jnp.bfloat16), b.astype(jnp.bfloat16),
                       preferred_element_type=jnp.float32)

    def kernel(*refs):
        it = iter(refs)
        x2_ref = next(it); w1_ref = next(it); b1_ref = next(it)
        gw_ref = next(it); gb_ref = next(it)
        sstr_ref = next(it); wb_ref = next(it); tb_ref = next(it)
        wpo_ref = next(it); ob_ref = next(it)
        mavg_ref = next(it) if use_mavg else None
        mask_ref = next(it)
        siw_ref = next(it); sib_ref = next(it)
        sstg_ref = next(it)
        slw_ref = next(it); slb_ref = next(it)
        sow_ref = next(it); sob_ref = next(it)
        out_ref = next(it)

        mask = mask_ref[...]                                    # (N*T, 1) f32

        # ---------------- ST-GCN stream ----------------
        # folded data_bn (eval affine) + conv_1x1: (B*T, V*C) @ (V*C, V*F)
        h = mm(x2_ref[...], w1_ref[...]) + b1_ref[...]          # (B*T, V*F) f32, lane-dense

        def stream_layer(l, h):
            # gcn (1x1 conv + graph mix with A*importance) + BN1 folded into one matmul
            g = jnp.maximum(mm(h, gw_ref[l]) + gb_ref[l], 0.0)              # BN1 + ReLU
            # temporal dilated conv (k=3) + BN2:  sum_j S[l,j] @ g @ Wb[l,j]
            acc = mm(mm(sstr_ref[l, 0], g), wb_ref[l, 0])
            acc = acc + mm(mm(sstr_ref[l, 1], g), wb_ref[l, 1])
            acc = acc + mm(mm(sstr_ref[l, 2], g), wb_ref[l, 2])
            # per the reference st_gcn: x = relu(tcn(gcn(x))); x = x + res  (ReLU BEFORE add)
            return jnp.maximum(acc + tb_ref[l], 0.0) + h

        h = lax.fori_loop(0, n_stream_layers, stream_layer, h)

        # avg_pool over V + conv_out folded into one matmul epilogue
        logits = mm(h, wpo_ref[...]) + ob_ref[...]               # (B*T, ncls)
        if use_mavg:
            logits = mm(mavg_ref[...], logits)                   # mean over M -> (N*T, ncls)
        out = logits * mask
        out_ref[0] = out

        # ---------------- MS-TCN refinement stages ----------------
        for s in range(n_stages):
            # softmax over classes (PyTorch dim=1), then mask
            e = jnp.exp(out - jnp.max(out, axis=-1, keepdims=True))
            p = e * pl.reciprocal(jnp.sum(e, axis=-1, keepdims=True), approx=True) * mask

            hh = mm(p, siw_ref[s]) + sib_ref[s]                  # conv_1x1: ncls -> F

            def stage_layer(i, hh, s=s):
                a = mm(mm(sstg_ref[i, 0], hh), slw_ref[s, i, 0])
                a = a + mm(mm(sstg_ref[i, 1], hh), slw_ref[s, i, 1])
                a = a + mm(mm(sstg_ref[i, 2], hh), slw_ref[s, i, 2])
                # DilatedResidualLayer: dilated conv -> BN -> ReLU -> +res -> *mask
                return (jnp.maximum(a + slb_ref[s, i], 0.0) + hh) * mask

            hh = lax.fori_loop(0, n_stage_layers, stage_layer, hh)
            out = (mm(hh, sow_ref[s]) + sob_ref[s]) * mask
            out_ref[s + 1] = out

    return kernel


# ----------------------------- forward wrapper ------------------------------ #

def multistage_forward(params, x, mask):
    """MultiStageModel. x: (N, C, T, V, M), mask: (N, num_classes, T).
    Returns (num_R, N, num_classes, T) — same layout as PyTorch."""
    sp, st = params['stream'], params['stages']
    N, C, T, V, M = x.shape
    F = sp['conv1_w'].shape[1]
    L = sp['gcn_w'].shape[0]
    ncls = sp['out_w'].shape[1]
    S = st['in_w'].shape[0]
    Lr = st['w'].shape[1]
    B = N * M
    dil = tuple(CONFIG['dil'])
    f32, bf16 = jnp.float32, jnp.bfloat16

    # -------- input / mask preprocessing (tiny, one-time XLA ops) --------
    # (N, C, T, V, M) -> (N, M, T, V, C) -> (B*T, V*C): columns ordered v*C + c
    x2 = jnp.transpose(x, (0, 4, 2, 3, 1)).reshape(B * T, V * C).astype(f32)
    mask_nt = mask[:, 0, :].reshape(N * T, 1).astype(f32)

    eyeV = jnp.eye(V, dtype=f32)

    # -------- fold data_bn (eval affine) + conv_1x1 into one block-diag matmul --------
    dbn_s = sp['data_bn_scale'].reshape(V, C)
    dbn_t = sp['data_bn_shift'].reshape(V, C)
    w1 = jnp.einsum('vw,vc,cf->vcwf', eyeV, dbn_s, sp['conv1_w']).reshape(V * C, V * F)
    b1 = (dbn_t @ sp['conv1_w'] + sp['conv1_b'][None, :]).reshape(1, V * F)

    # -------- fold gcn 1x1 + graph einsum (A*edge_importance) + BN1, per layer --------
    a_eff = sp['A'][None] * sp['edge_importance']                       # (L, K, V, V)
    bn1s = jnp.tile(sp['bn1_scale'], (1, V))                            # (L, V*F), col w*F+f
    bn1t = jnp.tile(sp['bn1_shift'], (1, V))
    gw = jnp.einsum('lkvw,lkcd->lvcwd', a_eff, sp['gcn_w']).reshape(L, V * F, V * F)
    gb = jnp.einsum('lkvw,lkd->lwd', a_eff, sp['gcn_b']).reshape(L, 1, V * F)
    gw = gw * bn1s[:, None, :]
    gb = gb * bn1s[:, None, :] + bn1t[:, None, :]

    # -------- temporal conv: shift matrices + block-diag tap weights (BN2 folded) --------
    bn2s = jnp.tile(sp['bn2_scale'], (1, V))
    wb = jnp.einsum('vw,ljcf->ljvcwf', eyeV, sp['tconv_w']).reshape(L, 3, V * F, V * F)
    wb = wb * bn2s[:, None, None, :]
    tbias = jnp.tile(sp['tconv_b'] * sp['bn2_scale'] + sp['bn2_shift'],
                     (1, V)).reshape(L, 1, V * F)
    eyeB = jnp.eye(B, dtype=f32)
    sstr = jnp.stack([
        jnp.stack([jnp.kron(eyeB, jnp.eye(T, k=(j - 1) * dil[l], dtype=f32))
                   for j in range(3)])
        for l in range(L)])                                             # (L, 3, B*T, B*T)

    # -------- avg_pool over V + conv_out fold; mean over M (skipped when M == 1) --------
    wpo = jnp.tile(sp['out_w'], (V, 1)) / V                             # (V*F, ncls)
    ob = sp['out_b'].reshape(1, ncls)
    use_mavg = M > 1
    if use_mavg:
        mavg = (jnp.kron(jnp.eye(N, dtype=f32),
                         jnp.tile(jnp.eye(T, dtype=f32), (1, M))) / M)  # (N*T, B*T)

    # -------- refinement-stage params (stacked over stages); stage BN folded in --------
    siw, sib = st['in_w'], st['in_b'].reshape(S, 1, F)
    slw = st['w'] * st['bn_scale'][:, :, None, None, :]                 # (S, Lr, 3, F, F)
    slb = (st['b'] * st['bn_scale'] + st['bn_shift']).reshape(S, Lr, 1, F)
    sow, sob = st['out_w'], st['out_b'].reshape(S, 1, ncls)
    eyeN = jnp.eye(N, dtype=f32)
    sstg = jnp.stack([
        jnp.stack([jnp.kron(eyeN, jnp.eye(T, k=(j - 1) * dil[i], dtype=f32))
                   for j in range(3)])
        for i in range(Lr)])                                            # (Lr, 3, N*T, N*T)

    # bf16 for every matmul operand (weights + shift matrices); biases/activations f32.
    operands = [x2, w1.astype(bf16), b1,
                gw.astype(bf16), gb,
                sstr.astype(bf16), wb.astype(bf16), tbias,
                wpo.astype(bf16), ob]
    if use_mavg:
        operands.append(mavg.astype(bf16))
    operands += [mask_nt,
                 siw.astype(bf16), sib,
                 sstg.astype(bf16),
                 slw.astype(bf16), slb,
                 sow.astype(bf16), sob]

    kernel = _make_msgcn_kernel(L, Lr, S, use_mavg)
    out = pl.pallas_call(
        kernel,
        out_shape=jax.ShapeDtypeStruct((S + 1, N * T, ncls), f32),
        compiler_params=pltpu.CompilerParams(vmem_limit_bytes=32 * 1024 * 1024),
    )(*operands)

    # (num_R, N*T, ncls) -> (num_R, N, num_classes, T)
    return jnp.transpose(out.reshape(S + 1, N, T, ncls), (0, 1, 3, 2))


# ----------------------------- parameter init ------------------------------- #

def init_params(key):
    cfg = CONFIG
    C, ncls, F = cfg['dim'], cfg['num_classes'], cfg['num_f_maps']
    V, K = cfg['V'], cfg['K']
    L = len(cfg['dil'])
    S, Lr = cfg['num_R'] - 1, cfg['num_layers_R']
    it = iter(jax.random.split(key, 64))

    def rnd(shape, scale=0.1):
        return (scale * jax.random.normal(next(it), shape)).astype(jnp.float32)

    def bn_fold(shape):
        gamma = 1.0 + 0.1 * jax.random.normal(next(it), shape)
        beta = 0.1 * jax.random.normal(next(it), shape)
        rm = 0.1 * jax.random.normal(next(it), shape)
        rv = 1.0 + 0.2 * jax.random.uniform(next(it), shape)
        scale = gamma / jnp.sqrt(rv + 1e-5)
        shift = beta - rm * scale
        return scale.astype(jnp.float32), shift.astype(jnp.float32)

    # TODO(synk): synthetic adjacency (Graph(layout='sail') not available in-script).
    a_raw = jax.random.uniform(next(it), (K, V, V), dtype=jnp.float32)
    A = a_raw / jnp.sum(a_raw, axis=-1, keepdims=True)

    dbn_s, dbn_t = bn_fold((V * C,))
    bn1_s, bn1_t = bn_fold((L, F))
    bn2_s, bn2_t = bn_fold((L, F))
    sbn_s, sbn_t = bn_fold((S, Lr, F))

    stream = dict(
        A=A,
        edge_importance=jnp.ones((L, K, V, V), jnp.float32),
        data_bn_scale=dbn_s, data_bn_shift=dbn_t,
        conv1_w=rnd((C, F)), conv1_b=rnd((F,)),
        gcn_w=rnd((L, K, F, F)), gcn_b=rnd((L, K, F)),      # per-k weight of the K*F 1x1 conv
        bn1_scale=bn1_s, bn1_shift=bn1_t,
        tconv_w=rnd((L, 3, F, F)), tconv_b=rnd((L, F)),     # tap j <-> time offset (j-1)*dil
        bn2_scale=bn2_s, bn2_shift=bn2_t,
        out_w=rnd((F, ncls)), out_b=rnd((ncls,)),
    )
    stages = dict(
        in_w=rnd((S, ncls, F)), in_b=rnd((S, F)),
        w=rnd((S, Lr, 3, F, F)), b=rnd((S, Lr, F)),
        bn_scale=sbn_s, bn_shift=sbn_t,
        out_w=rnd((S, F, ncls)), out_b=rnd((S, ncls)),
    )
    return dict(stream=stream, stages=stages)


# ----------------------------------- main ----------------------------------- #

if __name__ == "__main__":
    cfg = CONFIG
    key = jax.random.PRNGKey(0)
    kx, kp = jax.random.split(key)

    x = jax.random.normal(
        kx, (cfg['N'], cfg['dim'], cfg['T'], cfg['V'], cfg['M']), dtype=jnp.float32)
    mask = jnp.ones((cfg['N'], cfg['num_classes'], cfg['T']), dtype=jnp.float32)
    mask = mask.at[1, :, 12:].set(0.0)   # deterministic padding mask

    params = init_params(kp)
    fwd = jax.jit(multistage_forward)
    out = jax.block_until_ready(fwd(params, x, mask))

    assert out.shape == (cfg['num_R'], cfg['N'], cfg['num_classes'], cfg['T'])
    assert out.dtype == jnp.float32
    assert bool(jnp.all(jnp.isfinite(out)))
    print("KERNEL_OK")
</pallas_src>

<mosaic_0001>
module attributes {stable_mosaic.version = 11 : i64} {
  func.func @kernel(%arg0: memref<32x32xf32, #tpu.memory_space<vmem>>, %arg1: memref<32x256xbf16, #tpu.memory_space<vmem>>, %arg2: memref<1x256xf32, #tpu.memory_space<vmem>>, %arg3: memref<10x256x256xbf16, #tpu.memory_space<vmem>>, %arg4: memref<10x1x256xf32, #tpu.memory_space<vmem>>, %arg5: memref<10x3x32x32xbf16, #tpu.memory_space<vmem>>, %arg6: memref<10x3x256x256xbf16, #tpu.memory_space<vmem>>, %arg7: memref<10x1x256xf32, #tpu.memory_space<vmem>>, %arg8: memref<256x6xbf16, #tpu.memory_space<vmem>>, %arg9: memref<1x6xf32, #tpu.memory_space<vmem>>, %arg10: memref<32x1xf32, #tpu.memory_space<vmem>>, %arg11: memref<2x6x32xbf16, #tpu.memory_space<vmem>>, %arg12: memref<2x1x32xf32, #tpu.memory_space<vmem>>, %arg13: memref<3x3x32x32xbf16, #tpu.memory_space<vmem>>, %arg14: memref<2x3x3x32x32xbf16, #tpu.memory_space<vmem>>, %arg15: memref<2x3x1x32xf32, #tpu.memory_space<vmem>>, %arg16: memref<2x32x6xbf16, #tpu.memory_space<vmem>>, %arg17: memref<2x1x6xf32, #tpu.memory_space<vmem>>, %arg18: memref<3x32x6xf32, #tpu.memory_space<vmem>>) attributes {dimension_semantics = [], scalar_prefetch = 0 : i64, scratch_operands = 0 : i64, tpu.core_type = #tpu.core_type<tc>} {
    %c0 = arith.constant 0 : index
    %c0_0 = arith.constant 0 : index
    %0 = vector.load %arg10[%c0, %c0_0] : memref<32x1xf32, #tpu.memory_space<vmem>>, vector<32x1xf32>
    %c0_1 = arith.constant 0 : index
    %c0_2 = arith.constant 0 : index
    %1 = vector.load %arg0[%c0_1, %c0_2] : memref<32x32xf32, #tpu.memory_space<vmem>>, vector<32x32xf32>
    %c0_3 = arith.constant 0 : index
    %c0_4 = arith.constant 0 : index
    %2 = vector.load %arg1[%c0_3, %c0_4] : memref<32x256xbf16, #tpu.memory_space<vmem>>, vector<32x256xbf16>
    %3 = arith.truncf %1 : vector<32x32xf32> to vector<32x32xbf16>
    %cst = arith.constant dense<0.000000e+00> : vector<32x256xf32>
    %4 = tpu.matmul %3, %2, %cst {dimension_numbers = #tpu.dot_dimension_numbers<[1], [0], [0], [1], [0, 0, 1, 1], [], []>} : vector<32x32xbf16>, vector<32x256xbf16>, vector<32x256xf32> -> vector<32x256xf32>
    %c0_5 = arith.constant 0 : index
    %c0_6 = arith.constant 0 : index
    %5 = vector.load %arg2[%c0_5, %c0_6] : memref<1x256xf32, #tpu.memory_space<vmem>>, vector<1x256xf32>
    %6 = vector.broadcast %5 : vector<1x256xf32> to vector<32x256xf32>
    %7 = arith.addf %4, %6 : vector<32x256xf32>
    %c0_i32 = arith.constant 0 : i32
    %c10_i32 = arith.constant 10 : i32
    %8 = arith.addi %c0_i32, %c10_i32 : i32
    %c1_i32 = arith.constant 1 : i32
    %9 = scf.for %arg19 = %c0_i32 to %8 step %c1_i32 iter_args(%arg20 = %7) -> (vector<32x256xf32>)  : i32 {
      %91 = arith.index_cast %arg19 : i32 to index
      %c0_59 = arith.constant 0 : index
      %c0_60 = arith.constant 0 : index
      %92 = vector.load %arg3[%91, %c0_59, %c0_60] : memref<10x256x256xbf16, #tpu.memory_space<vmem>>, vector<1x256x256xbf16>
      %93 = vector.shape_cast %92 : vector<1x256x256xbf16> to vector<256x256xbf16>
      %94 = arith.truncf %arg20 : vector<32x256xf32> to vector<32x256xbf16>
      %cst_61 = arith.constant dense<0.000000e+00> : vector<32x256xf32>
      %95 = tpu.matmul %94, %93, %cst_61 {dimension_numbers = #tpu.dot_dimension_numbers<[1], [0], [0], [1], [0, 0, 1, 1], [], []>} : vector<32x256xbf16>, vector<256x256xbf16>, vector<32x256xf32> -> vector<32x256xf32>
      %96 = arith.index_cast %arg19 : i32 to index
      %c0_62 = arith.constant 0 : index
      %c0_63 = arith.constant 0 : index
      %97 = vector.load %arg4[%96, %c0_62, %c0_63] : memref<10x1x256xf32, #tpu.memory_space<vmem>>, vector<1x1x256xf32>
      %98 = vector.shape_cast %97 : vector<1x1x256xf32> to vector<1x256xf32>
      %99 = vector.broadcast %98 : vector<1x256xf32> to vector<32x256xf32>
      %100 = arith.addf %95, %99 : vector<32x256xf32>
      %cst_64 = arith.constant 0.000000e+00 : f32
      %101 = vector.broadcast %cst_64 : f32 to vector<32x256xf32>
      %102 = arith.maximumf %100, %101 : vector<32x256xf32>
      %103 = arith.index_cast %arg19 : i32 to index
      %c0_65 = arith.constant 0 : index
      %c0_66 = arith.constant 0 : index
      %c0_67 = arith.constant 0 : index
      %104 = vector.load %arg5[%103, %c0_65, %c0_66, %c0_67] : memref<10x3x32x32xbf16, #tpu.memory_space<vmem>>, vector<1x1x32x32xbf16>
      %105 = vector.shape_cast %104 : vector<1x1x32x32xbf16> to vector<32x32xbf16>
      %106 = arith.truncf %102 : vector<32x256xf32> to vector<32x256xbf16>
      %cst_68 = arith.constant dense<0.000000e+00> : vector<32x256xf32>
      %107 = tpu.matmul %105, %106, %cst_68 {dimension_numbers = #tpu.dot_dimension_numbers<[1], [0], [0], [1], [0, 0, 1, 1], [], []>} : vector<32x32xbf16>, vector<32x256xbf16>, vector<32x256xf32> -> vector<32x256xf32>
      %108 = arith.index_cast %arg19 : i32 to index
      %c0_69 = arith.constant 0 : index
      %c0_70 = arith.constant 0 : index
      %c0_71 = arith.constant 0 : index
      %109 = vector.load %arg6[%108, %c0_69, %c0_70, %c0_71] : memref<10x3x256x256xbf16, #tpu.memory_space<vmem>>, vector<1x1x256x256xbf16>
      %110 = vector.shape_cast %109 : vector<1x1x256x256xbf16> to vector<256x256xbf16>
      %111 = arith.truncf %107 : vector<32x256xf32> to vector<32x256xbf16>
      %cst_72 = arith.constant dense<0.000000e+00> : vector<32x256xf32>
      %112 = tpu.matmul %111, %110, %cst_72 {dimension_numbers = #tpu.dot_dimension_numbers<[1], [0], [0], [1], [0, 0, 1, 1], [], []>} : vector<32x256xbf16>, vector<256x256xbf16>, vector<32x256xf32> -> vector<32x256xf32>
      %113 = arith.index_cast %arg19 : i32 to index
      %c1_73 = arith.constant 1 : index
      %c0_74 = arith.constant 0 : index
      %c0_75 = arith.constant 0 : index
      %114 = vector.load %arg5[%113, %c1_73, %c0_74, %c0_75] : memref<10x3x32x32xbf16, #tpu.memory_space<vmem>>, vector<1x1x32x32xbf16>
      %115 = vector.shape_cast %114 : vector<1x1x32x32xbf16> to vector<32x32xbf16>
      %116 = arith.truncf %102 : vector<32x256xf32> to vector<32x256xbf16>
      %cst_76 = arith.constant dense<0.000000e+00> : vector<32x256xf32>
      %117 = tpu.matmul %115, %116, %cst_76 {dimension_numbers = #tpu.dot_dimension_numbers<[1], [0], [0], [1], [0, 0, 1, 1], [], []>} : vector<32x32xbf16>, vector<32x256xbf16>, vector<32x256xf32> -> vector<32x256xf32>
      %118 = arith.index_cast %arg19 : i32 to index
      %c1_77 = arith.constant 1 : index
      %c0_78 = arith.constant 0 : index
      %c0_79 = arith.constant 0 : index
      %119 = vector.load %arg6[%118, %c1_77, %c0_78, %c0_79] : memref<10x3x256x256xbf16, #tpu.memory_space<vmem>>, vector<1x1x256x256xbf16>
      %120 = vector.shape_cast %119 : vector<1x1x256x256xbf16> to vector<256x256xbf16>
      %121 = arith.truncf %117 : vector<32x256xf32> to vector<32x256xbf16>
      %cst_80 = arith.constant dense<0.000000e+00> : vector<32x256xf32>
      %122 = tpu.matmul %121, %120, %cst_80 {dimension_numbers = #tpu.dot_dimension_numbers<[1], [0], [0], [1], [0, 0, 1, 1], [], []>} : vector<32x256xbf16>, vector<256x256xbf16>, vector<32x256xf32> -> vector<32x256xf32>
      %123 = arith.addf %112, %122 : vector<32x256xf32>
      %124 = arith.index_cast %arg19 : i32 to index
      %c2_81 = arith.constant 2 : index
      %c0_82 = arith.constant 0 : index
      %c0_83 = arith.constant 0 : index
      %125 = vector.load %arg5[%124, %c2_81, %c0_82, %c0_83] : memref<10x3x32x32xbf16, #tpu.memory_space<vmem>>, vector<1x1x32x32xbf16>
      %126 = vector.shape_cast %125 : vector<1x1x32x32xbf16> to vector<32x32xbf16>
      %127 = arith.truncf %102 : vector<32x256xf32> to vector<32x256xbf16>
      %cst_84 = arith.constant dense<0.000000e+00> : vector<32x256xf32>
      %128 = tpu.matmul %126, %127, %cst_84 {dimension_numbers = #tpu.dot_dimension_numbers<[1], [0], [0], [1], [0, 0, 1, 1], [], []>} : vector<32x32xbf16>, vector<32x256xbf16>, vector<32x256xf32> -> vector<32x256xf32>
      %129 = arith.index_cast %arg19 : i32 to index
      %c2_85 = arith.constant 2 : index
      %c0_86 = arith.constant 0 : index
      %c0_87 = arith.constant 0 : index
      %130 = vector.load %arg6[%129, %c2_85, %c0_86, %c0_87] : memref<10x3x256x256xbf16, #tpu.memory_space<vmem>>, vector<1x1x256x256xbf16>
      %131 = vector.shape_cast %130 : vector<1x1x256x256xbf16> to vector<256x256xbf16>
      %132 = arith.truncf %128 : vector<32x256xf32> to vector<32x256xbf16>
      %cst_88 = arith.constant dense<0.000000e+00> : vector<32x256xf32>
      %133 = tpu.matmul %132, %131, %cst_88 {dimension_numbers = #tpu.dot_dimension_numbers<[1], [0], [0], [1], [0, 0, 1, 1], [], []>} : vector<32x256xbf16>, vector<256x256xbf16>, vector<32x256xf32> -> vector<32x256xf32>
      %134 = arith.addf %123, %133 : vector<32x256xf32>
      %135 = arith.index_cast %arg19 : i32 to index
      %c0_89 = arith.constant 0 : index
      %c0_90 = arith.constant 0 : index
      %136 = vector.load %arg7[%135, %c0_89, %c0_90] : memref<10x1x256xf32, #tpu.memory_space<vmem>>, vector<1x1x256xf32>
      %137 = vector.shape_cast %136 : vector<1x1x256xf32> to vector<1x256xf32>
      %138 = vector.broadcast %137 : vector<1x256xf32> to vector<32x256xf32>
      %139 = arith.addf %134, %138 : vector<32x256xf32>
      %cst_91 = arith.constant 0.000000e+00 : f32
      %140 = vector.broadcast %cst_91 : f32 to vector<32x256xf32>
      %141 = arith.maximumf %139, %140 : vector<32x256xf32>
      %142 = arith.addf %141, %arg20 : vector<32x256xf32>
      scf.yield %142 : vector<32x256xf32>
    }
    %c10_i32_7 = arith.constant 10 : i32
    %c0_8 = arith.constant 0 : index
    %c0_9 = arith.constant 0 : index
    %10 = vector.load %arg8[%c0_8, %c0_9] : memref<256x6xbf16, #tpu.memory_space<vmem>>, vector<256x6xbf16>
    %11 = arith.truncf %9 : vector<32x256xf32> to vector<32x256xbf16>
    %cst_10 = arith.constant dense<0.000000e+00> : vector<32x6xf32>
    %12 = tpu.matmul %11, %10, %cst_10 {dimension_numbers = #tpu.dot_dimension_numbers<[1], [0], [0], [1], [0, 0, 1, 1], [], []>} : vector<32x256xbf16>, vector<256x6xbf16>, vector<32x6xf32> -> vector<32x6xf32>
    %c0_11 = arith.constant 0 : index
    %c0_12 = arith.constant 0 : index
    %13 = vector.load %arg9[%c0_11, %c0_12] : memref<1x6xf32, #tpu.memory_space<vmem>>, vector<1x6xf32>
    %14 = vector.broadcast %13 : vector<1x6xf32> to vector<32x6xf32>
    %15 = arith.addf %12, %14 : vector<32x6xf32>
    %16 = vector.broadcast %0 : vector<32x1xf32> to vector<32x6xf32>
    %17 = arith.mulf %15, %16 : vector<32x6xf32>
    %c0_13 = arith.constant 0 : index
    %c0_14 = arith.constant 0 : index
    %c0_15 = arith.constant 0 : index
    %18 = vector.load %arg18[%c0_13, %c0_14, %c0_15] : memref<3x32x6xf32, #tpu.memory_space<vmem>>, vector<1x32x6xf32>
    %19 = vector.shape_cast %18 : vector<1x32x6xf32> to vector<32x6xf32>
    %20 = vector.shape_cast %17 : vector<32x6xf32> to vector<1x32x6xf32>
    tpu.vector_store %arg18[%c0_13, %c0_14, %c0_15], %20 {strides = array<i32>} : memref<3x32x6xf32, #tpu.memory_space<vmem>>, vector<1x32x6xf32>,
    %cst_16 = arith.constant dense<0xFF800000> : vector<32xf32>
    %21 = vector.multi_reduction <maximumf>, %17, %cst_16 [1] : vector<32x6xf32> to vector<32xf32>
    %22 = vector.shape_cast %21 : vector<32xf32> to vector<32x1xf32>
    %23 = vector.broadcast %22 : vector<32x1xf32> to vector<32x6xf32>
    %24 = arith.subf %17, %23 : vector<32x6xf32>
    %25 = math.exp %24 : vector<32x6xf32>
    %cst_17 = arith.constant dense<0.000000e+00> : vector<32xf32>
    %26 = vector.multi_reduction <add>, %25, %cst_17 [1] : vector<32x6xf32> to vector<32xf32>
    %27 = vector.shape_cast %26 : vector<32xf32> to vector<32x1xf32>
    %28 = tpu.reciprocal %27 {approx = true} : vector<32x1xf32> -> vector<32x1xf32>
    %29 = vector.broadcast %28 : vector<32x1xf32> to vector<32x6xf32>
    %30 = arith.mulf %25, %29 : vector<32x6xf32>
    %31 = vector.broadcast %0 : vector<32x1xf32> to vector<32x6xf32>
    %32 = arith.mulf %30, %31 : vector<32x6xf32>
    %c0_18 = arith.constant 0 : index
    %c0_19 = arith.constant 0 : index
    %c0_20 = arith.constant 0 : index
    %33 = vector.load %arg11[%c0_18, %c0_19, %c0_20] : memref<2x6x32xbf16, #tpu.memory_space<vmem>>, vector<1x6x32xbf16>
    %34 = vector.shape_cast %33 : vector<1x6x32xbf16> to vector<6x32xbf16>
    %35 = arith.truncf %32 : vector<32x6xf32> to vector<32x6xbf16>
    %cst_21 = arith.constant dense<0.000000e+00> : vector<32x32xf32>
    %36 = tpu.matmul %35, %34, %cst_21 {dimension_numbers = #tpu.dot_dimension_numbers<[1], [0], [0], [1], [0, 0, 1, 1], [], []>} : vector<32x6xbf16>, vector<6x32xbf16>, vector<32x32xf32> -> vector<32x32xf32>
    %c0_22 = arith.constant 0 : index
    %c0_23 = arith.constant 0 : index
    %c0_24 = arith.constant 0 : index
    %37 = vector.load %arg12[%c0_22, %c0_23, %c0_24] : memref<2x1x32xf32, #tpu.memory_space<vmem>>, vector<1x1x32xf32>
    %38 = vector.shape_cast %37 : vector<1x1x32xf32> to vector<1x32xf32>
    %39 = vector.broadcast %38 : vector<1x32xf32> to vector<32x32xf32>
    %40 = arith.addf %36, %39 : vector<32x32xf32>
    %c0_i32_25 = arith.constant 0 : i32
    %c3_i32 = arith.constant 3 : i32
    %41 = arith.addi %c0_i32_25, %c3_i32 : i32
    %c1_i32_26 = arith.constant 1 : i32
    %42 = scf.for %arg19 = %c0_i32_25 to %41 step %c1_i32_26 iter_args(%arg20 = %40) -> (vector<32x32xf32>)  : i32 {
      %91 = arith.index_cast %arg19 : i32 to index
      %c0_59 = arith.constant 0 : index
      %c0_60 = arith.constant 0 : index
      %c0_61 = arith.constant 0 : index
      %92 = vector.load %arg13[%91, %c0_59, %c0_60, %c0_61] : memref<3x3x32x32xbf16, #tpu.memory_space<vmem>>, vector<1x1x32x32xbf16>
      %93 = vector.shape_cast %92 : vector<1x1x32x32xbf16> to vector<32x32xbf16>
      %94 = arith.truncf %arg20 : vector<32x32xf32> to vector<32x32xbf16>
      %cst_62 = arith.constant dense<0.000000e+00> : vector<32x32xf32>
      %95 = tpu.matmul %93, %94, %cst_62 {dimension_numbers = #tpu.dot_dimension_numbers<[1], [0], [0], [1], [0, 0, 1, 1], [], []>} : vector<32x32xbf16>, vector<32x32xbf16>, vector<32x32xf32> -> vector<32x32xf32>
      %c0_63 = arith.constant 0 : index
      %96 = arith.index_cast %arg19 : i32 to index
      %c0_64 = arith.constant 0 : index
      %c0_65 = arith.constant 0 : index
      %c0_66 = arith.constant 0 : index
      %97 = vector.load %arg14[%c0_63, %96, %c0_64, %c0_65, %c0_66] : memref<2x3x3x32x32xbf16, #tpu.memory_space<vmem>>, vector<1x1x1x32x32xbf16>
      %98 = vector.shape_cast %97 : vector<1x1x1x32x32xbf16> to vector<32x32xbf16>
      %99 = arith.truncf %95 : vector<32x32xf32> to vector<32x32xbf16>
      %cst_67 = arith.constant dense<0.000000e+00> : vector<32x32xf32>
      %100 = tpu.matmul %99, %98, %cst_67 {dimension_numbers = #tpu.dot_dimension_numbers<[1], [0], [0], [1], [0, 0, 1, 1], [], []>} : vector<32x32xbf16>, vector<32x32xbf16>, vector<32x32xf32> -> vector<32x32xf32>
      %101 = arith.index_cast %arg19 : i32 to index
      %c1_68 = arith.constant 1 : index
      %c0_69 = arith.constant 0 : index
      %c0_70 = arith.constant 0 : index
      %102 = vector.load %arg13[%101, %c1_68, %c0_69, %c0_70] : memref<3x3x32x32xbf16, #tpu.memory_space<vmem>>, vector<1x1x32x32xbf16>
      %103 = vector.shape_cast %102 : vector<1x1x32x32xbf16> to vector<32x32xbf16>
      %104 = arith.truncf %arg20 : vector<32x32xf32> to vector<32x32xbf16>
      %cst_71 = arith.constant dense<0.000000e+00> : vector<32x32xf32>
      %105 = tpu.matmul %103, %104, %cst_71 {dimension_numbers = #tpu.dot_dimension_numbers<[1], [0], [0], [1], [0, 0, 1, 1], [], []>} : vector<32x32xbf16>, vector<32x32xbf16>, vector<32x32xf32> -> vector<32x32xf32>
      %c0_72 = arith.constant 0 : index
      %106 = arith.index_cast %arg19 : i32 to index
      %c1_73 = arith.constant 1 : index
      %c0_74 = arith.constant 0 : index
      %c0_75 = arith.constant 0 : index
      %107 = vector.load %arg14[%c0_72, %106, %c1_73, %c0_74, %c0_75] : memref<2x3x3x32x32xbf16, #tpu.memory_space<vmem>>, vector<1x1x1x32x32xbf16>
      %108 = vector.shape_cast %107 : vector<1x1x1x32x32xbf16> to vector<32x32xbf16>
      %109 = arith.truncf %105 : vector<32x32xf32> to vector<32x32xbf16>
      %cst_76 = arith.constant dense<0.000000e+00> : vector<32x32xf32>
      %110 = tpu.matmul %109, %108, %cst_76 {dimension_numbers = #tpu.dot_dimension_numbers<[1], [0], [0], [1], [0, 0, 1, 1], [], []>} : vector<32x32xbf16>, vector<32x32xbf16>, vector<32x32xf32> -> vector<32x32xf32>
      %111 = arith.addf %100, %110 : vector<32x32xf32>
      %112 = arith.index_cast %arg19 : i32 to index
      %c2_77 = arith.constant 2 : index
      %c0_78 = arith.constant 0 : index
      %c0_79 = arith.constant 0 : index
      %113 = vector.load %arg13[%112, %c2_77, %c0_78, %c0_79] : memref<3x3x32x32xbf16, #tpu.memory_space<vmem>>, vector<1x1x32x32xbf16>
      %114 = vector.shape_cast %113 : vector<1x1x32x32xbf16> to vector<32x32xbf16>
      %115 = arith.truncf %arg20 : vector<32x32xf32> to vector<32x32xbf16>
      %cst_80 = arith.constant dense<0.000000e+00> : vector<32x32xf32>
      %116 = tpu.matmul %114, %115, %cst_80 {dimension_numbers = #tpu.dot_dimension_numbers<[1], [0], [0], [1], [0, 0, 1, 1], [], []>} : vector<32x32xbf16>, vector<32x32xbf16>, vector<32x32xf32> -> vector<32x32xf32>
      %c0_81 = arith.constant 0 : index
      %117 = arith.index_cast %arg19 : i32 to index
      %c2_82 = arith.constant 2 : index
      %c0_83 = arith.constant 0 : index
      %c0_84 = arith.constant 0 : index
      %118 = vector.load %arg14[%c0_81, %117, %c2_82, %c0_83, %c0_84] : memref<2x3x3x32x32xbf16, #tpu.memory_space<vmem>>, vector<1x1x1x32x32xbf16>
      %119 = vector.shape_cast %118 : vector<1x1x1x32x32xbf16> to vector<32x32xbf16>
      %120 = arith.truncf %116 : vector<32x32xf32> to vector<32x32xbf16>
      %cst_85 = arith.constant dense<0.000000e+00> : vector<32x32xf32>
      %121 = tpu.matmul %120, %119, %cst_85 {dimension_numbers = #tpu.dot_dimension_numbers<[1], [0], [0], [1], [0, 0, 1, 1], [], []>} : vector<32x32xbf16>, vector<32x32xbf16>, vector<32x32xf32> -> vector<32x32xf32>
      %122 = arith.addf %111, %121 : vector<32x32xf32>
      %c0_86 = arith.constant 0 : index
      %123 = arith.index_cast %arg19 : i32 to index
      %c0_87 = arith.constant 0 : index
      %c0_88 = arith.constant 0 : index
      %124 = vector.load %arg15[%c0_86, %123, %c0_87, %c0_88] : memref<2x3x1x32xf32, #tpu.memory_space<vmem>>, vector<1x1x1x32xf32>
      %125 = vector.shape_cast %124 : vector<1x1x1x32xf32> to vector<1x32xf32>
      %126 = vector.broadcast %125 : vector<1x32xf32> to vector<32x32xf32>
      %127 = arith.addf %122, %126 : vector<32x32xf32>
      %cst_89 = arith.constant 0.000000e+00 : f32
      %128 = vector.broadcast %cst_89 : f32 to vector<32x32xf32>
      %129 = arith.maximumf %127, %128 : vector<32x32xf32>
      %130 = arith.addf %129, %arg20 : vector<32x32xf32>
      %131 = vector.broadcast %0 : vector<32x1xf32> to vector<32x32xf32>
      %132 = arith.mulf %130, %131 : vector<32x32xf32>
      scf.yield %132 : vector<32x32xf32>
    }
    %c3_i32_27 = arith.constant 3 : i32
    %c0_28 = arith.constant 0 : index
    %c0_29 = arith.constant 0 : index
    %c0_30 = arith.constant 0 : index
    %43 = vector.load %arg16[%c0_28, %c0_29, %c0_30] : memref<2x32x6xbf16, #tpu.memory_space<vmem>>, vector<1x32x6xbf16>
    %44 = vector.shape_cast %43 : vector<1x32x6xbf16> to vector<32x6xbf16>
    %45 = arith.truncf %42 : vector<32x32xf32> to vector<32x32xbf16>
    %cst_31 = arith.constant dense<0.000000e+00> : vector<32x6xf32>
    %46 = tpu.matmul %45, %44, %cst_31 {dimension_numbers = #tpu.dot_dimension_numbers<[1], [0], [0], [1], [0, 0, 1, 1], [], []>} : vector<32x32xbf16>, vector<32x6xbf16>, vector<32x6xf32> -> vector<32x6xf32>
    %c0_32 = arith.constant 0 : index
    %c0_33 = arith.constant 0 : index
    %c0_34 = arith.constant 0 : index
    %47 = vector.load %arg17[%c0_32, %c0_33, %c0_34] : memref<2x1x6xf32, #tpu.memory_space<vmem>>, vector<1x1x6xf32>
    %48 = vector.shape_cast %47 : vector<1x1x6xf32> to vector<1x6xf32>
    %49 = vector.broadcast %48 : vector<1x6xf32> to vector<32x6xf32>
    %50 = arith.addf %46, %49 : vector<32x6xf32>
    %51 = vector.broadcast %0 : vector<32x1xf32> to vector<32x6xf32>
    %52 = arith.mulf %50, %51 : vector<32x6xf32>
    %c1 = arith.constant 1 : index
    %c0_35 = arith.constant 0 : index
    %c0_36 = arith.constant 0 : index
    %53 = vector.load %arg18[%c1, %c0_35, %c0_36] : memref<3x32x6xf32, #tpu.memory_space<vmem>>, vector<1x32x6xf32>
    %54 = vector.shape_cast %53 : vector<1x32x6xf32> to vector<32x6xf32>
    %55 = vector.shape_cast %52 : vector<32x6xf32> to vector<1x32x6xf32>
    tpu.vector_store %arg18[%c1, %c0_35, %c0_36], %55 {strides = array<i32>} : memref<3x32x6xf32, #tpu.memory_space<vmem>>, vector<1x32x6xf32>,
    %cst_37 = arith.constant dense<0xFF800000> : vector<32xf32>
    %56 = vector.multi_reduction <maximumf>, %52, %cst_37 [1] : vector<32x6xf32> to vector<32xf32>
    %57 = vector.shape_cast %56 : vector<32xf32> to vector<32x1xf32>
    %58 = vector.broadcast %57 : vector<32x1xf32> to vector<32x6xf32>
    %59 = arith.subf %52, %58 : vector<32x6xf32>
    %60 = math.exp %59 : vector<32x6xf32>
    %cst_38 = arith.constant dense<0.000000e+00> : vector<32xf32>
    %61 = vector.multi_reduction <add>, %60, %cst_38 [1] : vector<32x6xf32> to vector<32xf32>
    %62 = vector.shape_cast %61 : vector<32xf32> to vector<32x1xf32>
    %63 = tpu.reciprocal %62 {approx = true} : vector<32x1xf32> -> vector<32x1xf32>
    %64 = vector.broadcast %63 : vector<32x1xf32> to vector<32x6xf32>
    %65 = arith.mulf %60, %64 : vector<32x6xf32>
    %66 = vector.broadcast %0 : vector<32x1xf32> to vector<32x6xf32>
    %67 = arith.mulf %65, %66 : vector<32x6xf32>
    %c1_39 = arith.constant 1 : index
    %c0_40 = arith.constant 0 : index
    %c0_41 = arith.constant 0 : index
    %68 = vector.load %arg11[%c1_39, %c0_40, %c0_41] : memref<2x6x32xbf16, #tpu.memory_space<vmem>>, vector<1x6x32xbf16>
    %69 = vector.shape_cast %68 : vector<1x6x32xbf16> to vector<6x32xbf16>
    %70 = arith.truncf %67 : vector<32x6xf32> to vector<32x6xbf16>
    %cst_42 = arith.constant dense<0.000000e+00> : vector<32x32xf32>
    %71 = tpu.matmul %70, %69, %cst_42 {dimension_numbers = #tpu.dot_dimension_numbers<[1], [0], [0], [1], [0, 0, 1, 1], [], []>} : vector<32x6xbf16>, vector<6x32xbf16>, vector<32x32xf32> -> vector<32x32xf32>
    %c1_43 = arith.constant 1 : index
    %c0_44 = arith.constant 0 : index
    %c0_45 = arith.constant 0 : index
    %72 = vector.load %arg12[%c1_43, %c0_44, %c0_45] : memref<2x1x32xf32, #tpu.memory_space<vmem>>, vector<1x1x32xf32>
    %73 = vector.shape_cast %72 : vector<1x1x32xf32> to vector<1x32xf32>
    %74 = vector.broadcast %73 : vector<1x32xf32> to vector<32x32xf32>
    %75 = arith.addf %71, %74 : vector<32x32xf32>
    %c0_i32_46 = arith.constant 0 : i32
    %c3_i32_47 = arith.constant 3 : i32
    %76 = arith.addi %c0_i32_46, %c3_i32_47 : i32
    %c1_i32_48 = arith.constant 1 : i32
    %77 = scf.for %arg19 = %c0_i32_46 to %76 step %c1_i32_48 iter_args(%arg20 = %75) -> (vector<32x32xf32>)  : i32 {
      %91 = arith.index_cast %arg19 : i32 to index
      %c0_59 = arith.constant 0 : index
      %c0_60 = arith.constant 0 : index
      %c0_61 = arith.constant 0 : index
      %92 = vector.load %arg13[%91, %c0_59, %c0_60, %c0_61] : memref<3x3x32x32xbf16, #tpu.memory_space<vmem>>, vector<1x1x32x32xbf16>
      %93 = vector.shape_cast %92 : vector<1x1x32x32xbf16> to vector<32x32xbf16>
      %94 = arith.truncf %arg20 : vector<32x32xf32> to vector<32x32xbf16>
      %cst_62 = arith.constant dense<0.000000e+00> : vector<32x32xf32>
      %95 = tpu.matmul %93, %94, %cst_62 {dimension_numbers = #tpu.dot_dimension_numbers<[1], [0], [0], [1], [0, 0, 1, 1], [], []>} : vector<32x32xbf16>, vector<32x32xbf16>, vector<32x32xf32> -> vector<32x32xf32>
      %c1_63 = arith.constant 1 : index
      %96 = arith.index_cast %arg19 : i32 to index
      %c0_64 = arith.constant 0 : index
      %c0_65 = arith.constant 0 : index
      %c0_66 = arith.constant 0 : index
      %97 = vector.load %arg14[%c1_63, %96, %c0_64, %c0_65, %c0_66] : memref<2x3x3x32x32xbf16, #tpu.memory_space<vmem>>, vector<1x1x1x32x32xbf16>
      %98 = vector.shape_cast %97 : vector<1x1x1x32x32xbf16> to vector<32x32xbf16>
      %99 = arith.truncf %95 : vector<32x32xf32> to vector<32x32xbf16>
      %cst_67 = arith.constant dense<0.000000e+00> : vector<32x32xf32>
      %100 = tpu.matmul %99, %98, %cst_67 {dimension_numbers = #tpu.dot_dimension_numbers<[1], [0], [0], [1], [0, 0, 1, 1], [], []>} : vector<32x32xbf16>, vector<32x32xbf16>, vector<32x32xf32> -> vector<32x32xf32>
      %101 = arith.index_cast %arg19 : i32 to index
      %c1_68 = arith.constant 1 : index
      %c0_69 = arith.constant 0 : index
      %c0_70 = arith.constant 0 : index
      %102 = vector.load %arg13[%101, %c1_68, %c0_69, %c0_70] : memref<3x3x32x32xbf16, #tpu.memory_space<vmem>>, vector<1x1x32x32xbf16>
      %103 = vector.shape_cast %102 : vector<1x1x32x32xbf16> to vector<32x32xbf16>
      %104 = arith.truncf %arg20 : vector<32x32xf32> to vector<32x32xbf16>
      %cst_71 = arith.constant dense<0.000000e+00> : vector<32x32xf32>
      %105 = tpu.matmul %103, %104, %cst_71 {dimension_numbers = #tpu.dot_dimension_numbers<[1], [0], [0], [1], [0, 0, 1, 1], [], []>} : vector<32x32xbf16>, vector<32x32xbf16>, vector<32x32xf32> -> vector<32x32xf32>
      %c1_72 = arith.constant 1 : index
      %106 = arith.index_cast %arg19 : i32 to index
      %c1_73 = arith.constant 1 : index
      %c0_74 = arith.constant 0 : index
      %c0_75 = arith.constant 0 : index
      %107 = vector.load %arg14[%c1_72, %106, %c1_73, %c0_74, %c0_75] : memref<2x3x3x32x32xbf16, #tpu.memory_space<vmem>>, vector<1x1x1x32x32xbf16>
      %108 = vector.shape_cast %107 : vector<1x1x1x32x32xbf16> to vector<32x32xbf16>
      %109 = arith.truncf %105 : vector<32x32xf32> to vector<32x32xbf16>
      %cst_76 = arith.constant dense<0.000000e+00> : vector<32x32xf32>
      %110 = tpu.matmul %109, %108, %cst_76 {dimension_numbers = #tpu.dot_dimension_numbers<[1], [0], [0], [1], [0, 0, 1, 1], [], []>} : vector<32x32xbf16>, vector<32x32xbf16>, vector<32x32xf32> -> vector<32x32xf32>
      %111 = arith.addf %100, %110 : vector<32x32xf32>
      %112 = arith.index_cast %arg19 : i32 to index
      %c2_77 = arith.constant 2 : index
      %c0_78 = arith.constant 0 : index
      %c0_79 = arith.constant 0 : index
      %113 = vector.load %arg13[%112, %c2_77, %c0_78, %c0_79] : memref<3x3x32x32xbf16, #tpu.memory_space<vmem>>, vector<1x1x32x32xbf16>
      %114 = vector.shape_cast %113 : vector<1x1x32x32xbf16> to vector<32x32xbf16>
      %115 = arith.truncf %arg20 : vector<32x32xf32> to vector<32x32xbf16>
      %cst_80 = arith.constant dense<0.000000e+00> : vector<32x32xf32>
      %116 = tpu.matmul %114, %115, %cst_80 {dimension_numbers = #tpu.dot_dimension_numbers<[1], [0], [0], [1], [0, 0, 1, 1], [], []>} : vector<32x32xbf16>, vector<32x32xbf16>, vector<32x32xf32> -> vector<32x32xf32>
      %c1_81 = arith.constant 1 : index
      %117 = arith.index_cast %arg19 : i32 to index
      %c2_82 = arith.constant 2 : index
      %c0_83 = arith.constant 0 : index
      %c0_84 = arith.constant 0 : index
      %118 = vector.load %arg14[%c1_81, %117, %c2_82, %c0_83, %c0_84] : memref<2x3x3x32x32xbf16, #tpu.memory_space<vmem>>, vector<1x1x1x32x32xbf16>
      %119 = vector.shape_cast %118 : vector<1x1x1x32x32xbf16> to vector<32x32xbf16>
      %120 = arith.truncf %116 : vector<32x32xf32> to vector<32x32xbf16>
      %cst_85 = arith.constant dense<0.000000e+00> : vector<32x32xf32>
      %121 = tpu.matmul %120, %119, %cst_85 {dimension_numbers = #tpu.dot_dimension_numbers<[1], [0], [0], [1], [0, 0, 1, 1], [], []>} : vector<32x32xbf16>, vector<32x32xbf16>, vector<32x32xf32> -> vector<32x32xf32>
      %122 = arith.addf %111, %121 : vector<32x32xf32>
      %c1_86 = arith.constant 1 : index
      %123 = arith.index_cast %arg19 : i32 to index
      %c0_87 = arith.constant 0 : index
      %c0_88 = arith.constant 0 : index
      %124 = vector.load %arg15[%c1_86, %123, %c0_87, %c0_88] : memref<2x3x1x32xf32, #tpu.memory_space<vmem>>, vector<1x1x1x32xf32>
      %125 = vector.shape_cast %124 : vector<1x1x1x32xf32> to vector<1x32xf32>
      %126 = vector.broadcast %125 : vector<1x32xf32> to vector<32x32xf32>
      %127 = arith.addf %122, %126 : vector<32x32xf32>
      %cst_89 = arith.constant 0.000000e+00 : f32
      %128 = vector.broadcast %cst_89 : f32 to vector<32x32xf32>
      %129 = arith.maximumf %127, %128 : vector<32x32xf32>
      %130 = arith.addf %129, %arg20 : vector<32x32xf32>
      %131 = vector.broadcast %0 : vector<32x1xf32> to vector<32x32xf32>
      %132 = arith.mulf %130, %131 : vector<32x32xf32>
      scf.yield %132 : vector<32x32xf32>
    }
    %c3_i32_49 = arith.constant 3 : i32
    %c1_50 = arith.constant 1 : index
    %c0_51 = arith.constant 0 : index
    %c0_52 = arith.constant 0 : index
    %78 = vector.load %arg16[%c1_50, %c0_51, %c0_52] : memref<2x32x6xbf16, #tpu.memory_space<vmem>>, vector<1x32x6xbf16>
    %79 = vector.shape_cast %78 : vector<1x32x6xbf16> to vector<32x6xbf16>
    %80 = arith.truncf %77 : vector<32x32xf32> to vector<32x32xbf16>
    %cst_53 = arith.constant dense<0.000000e+00> : vector<32x6xf32>
    %81 = tpu.matmul %80, %79, %cst_53 {dimension_numbers = #tpu.dot_dimension_numbers<[1], [0], [0], [1], [0, 0, 1, 1], [], []>} : vector<32x32xbf16>, vector<32x6xbf16>, vector<32x6xf32> -> vector<32x6xf32>
    %c1_54 = arith.constant 1 : index
    %c0_55 = arith.constant 0 : index
    %c0_56 = arith.constant 0 : index
    %82 = vector.load %arg17[%c1_54, %c0_55, %c0_56] : memref<2x1x6xf32, #tpu.memory_space<vmem>>, vector<1x1x6xf32>
    %83 = vector.shape_cast %82 : vector<1x1x6xf32> to vector<1x6xf32>
    %84 = vector.broadcast %83 : vector<1x6xf32> to vector<32x6xf32>
    %85 = arith.addf %81, %84 : vector<32x6xf32>
    %86 = vector.broadcast %0 : vector<32x1xf32> to vector<32x6xf32>
    %87 = arith.mulf %85, %86 : vector<32x6xf32>
    %c2 = arith.constant 2 : index
    %c0_57 = arith.constant 0 : index
    %c0_58 = arith.constant 0 : index
    %88 = vector.load %arg18[%c2, %c0_57, %c0_58] : memref<3x32x6xf32, #tpu.memory_space<vmem>>, vector<1x32x6xf32>
    %89 = vector.shape_cast %88 : vector<1x32x6xf32> to vector<32x6xf32>
    %90 = vector.shape_cast %87 : vector<32x6xf32> to vector<1x32x6xf32>
    tpu.vector_store %arg18[%c2, %c0_57, %c0_58], %90 {strides = array<i32>} : memref<3x32x6xf32, #tpu.memory_space<vmem>>, vector<1x32x6xf32>,
    return
  }
}

</mosaic_0001>

<bundles_post_ra>
// kernel: squeeze.0
= control target key start
LH: loop header
LB: loop body
LE: loop exit
PB: predicated region body
PF: predicated region fallthrough
CT: control target
= control target key end

     0   :  { %s130_s8 = smov 125   ;;  %s131_s9 = smov 126   ;;  %vm7_vm0 = vcmask 7168   ;;  %s221_s0 = inlined_call_operand.vmem [shape: f32[2,1,16], index: 0, kind: input, shape index: {}]   ;;  %s222_s1 = inlined_call_operand.vmem [shape: f32[32,1], index: 1, kind: output, shape index: {}]  }
   0x1   :  { %v4_v0 = vld [vmem:[%s221_s0] sm:$0x3]  ;;  %s129_s0 = smov 127   ;;  %s132_s10 = smov 124  }
   0x2   :  { %5 = vst [vmem:[#allocation0] sm:$0x3] %v4_v0  ;;  %s133_s11 = smov 123   ;;  %s134_s12 = smov 122  }
   0x3   :  { %s135_s13 = smov 121   ;;  %s136_s14 = smov 120  }
   0x4   :  { %s137_s17 = smov 119   ;;  %s138_s18 = smov 118  }
   0x5   :  { %s139_s19 = smov 117   ;;  %s140_s20 = smov 116  }
   0x6   :  { %s141_s21 = smov 115   ;;  %s142_s22 = smov 114  }
   0x7   :  { %s143_s23 = smov 113  }
   0x9   :  { %v9_v1 = vld [vmem:[#allocation0] sm:$0x3]  }
   0xa   :  { %v21_v2 = vld [vmem:[#allocation0] sm:$0x3]   ;;  %10 = vrot.lane.b32.xlu0 %v9_v1, %s129_s0 }
   0xb   :  { %22 = vrot.lane.b32.xlu1 %v21_v2, %s130_s8  ;;  %v15_v3 = vld [vmem:[#allocation0] sm:$0x3]  }
   0xc   :  { %v27_v4 = vld [vmem:[#allocation0] sm:$0x3]  }
   0xd   :  { %v33_v5 = vld [vmem:[#allocation0] sm:$0x3]  }
   0xe   :  { %16 = vrot.lane.b32.xlu0 %v15_v3, %s131_s9  ;;  %v39_v6 = vld [vmem:[#allocation0] sm:$0x3]  }
   0xf   :  { %28 = vrot.lane.b32.xlu1 %v27_v4, %s132_s10  ;;  %v45_v7 = vld [vmem:[#allocation0] sm:$0x3]  }
  0x10   :  { %v51_v8 = vld [vmem:[#allocation0] sm:$0x3]  }
  0x11   :  { %v57_v9 = vld [vmem:[#allocation0] sm:$0x3]  }
  0x12   :  { %34 = vrot.lane.b32.xlu0 %v33_v5, %s133_s11  ;;  %v63_v10 = vld [vmem:[#allocation0] sm:$0x3]  }
  0x13   :  { %40 = vrot.lane.b32.xlu1 %v39_v6, %s134_s12  ;;  %v6_v11 = vld [vmem:[#allocation0] sm:$0x3]  }
  0x14   :  { %8 = vst.msk [vmem:[%s222_s1] ss:$16 sm:$0x3] %vm7_vm0, %v6_v11   ;;  %v69_v12 = vld [vmem:[#allocation0] sm:$0x3]  }
  0x15   :  { %v75_v13 = vld [vmem:[#allocation0] sm:$0x3]  }
  0x16   :  { %46 = vrot.lane.b32.xlu0 %v45_v7, %s135_s13  ;;  %v81_v14 = vld [vmem:[#allocation0] sm:$0x3]  }
  0x17   :  { %52 = vrot.lane.b32.xlu1 %v51_v8, %s136_s14  ;;  %v87_v15 = vld [vmem:[#allocation0] sm:$0x3]  }
  0x18   :  { %v93_v16 = vld [vmem:[#allocation0] sm:$0x3]  }
  0x1a   :  { %58 = vrot.lane.b32.xlu0 %v57_v9, %s137_s17 }
  0x1b   :  { %64 = vrot.lane.b32.xlu1 %v63_v10, %s138_s18 }
  0x1e   :  { %70 = vrot.lane.b32.xlu0 %v69_v12, %s139_s19 }
  0x1f   :  { %76 = vrot.lane.b32.xlu1 %v75_v13, %s140_s20 }
  0x22   :  { %82 = vrot.lane.b32.xlu0 %v81_v14, %s141_s21 }
  0x23   :  { %88 = vrot.lane.b32.xlu1 %v87_v15, %s142_s22 }
  0x26   :  { %94 = vrot.lane.b32.xlu0 %v93_v16, %s143_s23 }
  0x7c   :  { %v11_v17 = vpop.permute.xlu0 %10  }
  0x7d   :  { %v23_v18 = vpop.permute.xlu1 %22   ;;  %99 = vst.msk [vmem:[%s222_s1 + $0x1] ss:$16 sm:$0x3] %vm7_vm0, %v11_v17  }
  0x7e   :  { %101 = vst.msk [vmem:[%s222_s1 + $0x3] ss:$16 sm:$0x3] %vm7_vm0, %v23_v18  }
  0x80   :  { %v17_v19 = vpop.permute.xlu0 %16  }
  0x81   :  { %v29_v20 = vpop.permute.xlu1 %28   ;;  %100 = vst.msk [vmem:[%s222_s1 + $0x2] ss:$16 sm:$0x3] %vm7_vm0, %v17_v19  }
  0x82   :  { %102 = vst.msk [vmem:[%s222_s1 + $0x4] ss:$16 sm:$0x3] %vm7_vm0, %v29_v20  }
  0x84   :  { %v35_v21 = vpop.permute.xlu0 %34  }
  0x85   :  { %v41_v22 = vpop.permute.xlu1 %40   ;;  %103 = vst.msk [vmem:[%s222_s1 + $0x5] ss:$16 sm:$0x3] %vm7_vm0, %v35_v21  }
  0x86   :  { %104 = vst.msk [vmem:[%s222_s1 + $0x6] ss:$16 sm:$0x3] %vm7_vm0, %v41_v22  }
  0x88   :  { %v47_v23 = vpop.permute.xlu0 %46  }
  0x89   :  { %v53_v24 = vpop.permute.xlu1 %52   ;;  %105 = vst.msk [vmem:[%s222_s1 + $0x7] ss:$16 sm:$0x3] %vm7_vm0, %v47_v23  }
  0x8a   :  { %106 = vst.msk [vmem:[%s222_s1 + $0x8] ss:$16 sm:$0x3] %vm7_vm0, %v53_v24  }
  0x8c   :  { %v59_v25 = vpop.permute.xlu0 %58  }
  0x8d   :  { %v65_v26 = vpop.permute.xlu1 %64   ;;  %107 = vst.msk [vmem:[%s222_s1 + $0x9] ss:$16 sm:$0x3] %vm7_vm0, %v59_v25  }
  0x8e   :  { %108 = vst.msk [vmem:[%s222_s1 + $0xa] ss:$16 sm:$0x3] %vm7_vm0, %v65_v26  }
  0x90   :  { %v71_v27 = vpop.permute.xlu0 %70  }
  0x91   :  { %v77_v28 = vpop.permute.xlu1 %76   ;;  %109 = vst.msk [vmem:[%s222_s1 + $0xb] ss:$16 sm:$0x3] %vm7_vm0, %v71_v27  }
  0x92   :  { %110 = vst.msk [vmem:[%s222_s1 + $0xc] ss:$16 sm:$0x3] %vm7_vm0, %v77_v28  }
  0x94   :  { %v83_v29 = vpop.permute.xlu0 %82  }
  0x95   :  { %v89_v30 = vpop.permute.xlu1 %88   ;;  %111 = vst.msk [vmem:[%s222_s1 + $0xd] ss:$16 sm:$0x3] %vm7_vm0, %v83_v29  }
  0x96   :  { %112 = vst.msk [vmem:[%s222_s1 + $0xe] ss:$16 sm:$0x3] %vm7_vm0, %v89_v30  }
  0x98   :  { %v95_v31 = vpop.permute.xlu0 %94  }
  0x99   :  { %113 = vst.msk [vmem:[%s222_s1 + $0xf] ss:$16 sm:$0x3] %vm7_vm0, %v95_v31  }

// kernel: multistage_forward.1
= control target key start
LH: loop header
LB: loop body
LE: loop exit
PB: predicated region body
PF: predicated region fallthrough
CT: control target
= control target key end

     0   :  { %v4443_v3 = vmov 0   ;;  %vm106_vm0 = vcmask 261120   ;;  %v76_v15 = vlaneseq  ;;  %s5232_s1 = inlined_call_operand.vmem [shape: bf16[32,256], index: 1, kind: input, shape index: {}]   ;;  %s5233_s3 = inlined_call_operand.vmem [shape: bf16[10,256,256], index: 3, kind: input, shape index: {}]   ;;  %s5234_s4 = inlined_call_operand.vmem [shape: f32[10,1,256], index: 4, kind: input, shape index: {}]   ;;  %s5235_s5 = inlined_call_operand.vmem [shape: bf16[10,3,32,32], index: 5, kind: input, shape index: {}]   ;;  %s5236_s6 = inlined_call_operand.vmem [shape: bf16[10,3,256,256], index: 6, kind: input, shape index: {}]   ;;  %s5237_s7 = inlined_call_operand.vmem [shape: f32[10,1,256], index: 7, kind: input, shape index: {}]   ;;  %s5238_s8 = inlined_call_operand.vmem [shape: bf16[256,6], index: 8, kind: input, shape index: {}]   ;;  %s5239_s9 = inlined_call_operand.vmem [shape: f32[1,6], index: 9, kind: input, shape index: {}]   ;;  %s5240_s10 = inlined_call_operand.vmem [shape: f32[32,1], index: 10, kind: input, shape index: {}]   ;;  %s5241_s11 = inlined_call_operand.vmem [shape: bf16[2,6,32], index: 11, kind: input, shape index: {}]   ;;  %s5242_s12 = inlined_call_operand.vmem [shape: f32[2,1,32], index: 12, kind: input, shape index: {}]   ;;  %s5243_s13 = inlined_call_operand.vmem [shape: bf16[3,3,32,32], index: 13, kind: input, shape index: {}]   ;;  %s5244_s14 = inlined_call_operand.vmem [shape: bf16[2,3,3,32,32], index: 14, kind: input, shape index: {}]   ;;  %s5245_s15 = inlined_call_operand.vmem [shape: f32[2,3,1,32], index: 15, kind: input, shape index: {}]   ;;  %s5246_s16 = inlined_call_operand.vmem [shape: bf16[2,32,6], index: 16, kind: input, shape index: {}]   ;;  %s5247_s17 = inlined_call_operand.vmem [shape: f32[2,1,6], index: 17, kind: input, shape index: {}]   ;;  %s5248_s18 = inlined_call_operand.vmem [shape: f32[3,32,6], index: 18, kind: output, shape index: {}]   ;;  %s5249_s0 = inlined_call_operand.vmem [shape: f32[32,32], index: 0, kind: input, shape index: {}]   ;;  %s5250_s2 = inlined_call_operand.vmem [shape: f32[1,256], index: 2, kind: input, shape index: {}]  }
   0x1   :  { %5252 = sst [smem:[#allocation2_spill]] %s5232_s1  ;;  %v4543_v0 = vld [vmem:[%s5240_s10] sm:$0xff]  ;;  %v4548_v1 = vld [vmem:[%s5240_s10 + $0x8] sm:$0xff]  ;;  %v4553_v2 = vld [vmem:[%s5240_s10 + $0x10] sm:$0xff]  ;;  %145 = vmatprep.mubr.bf16.mxu0 %v4443_v3  ;;  %155 = vmatprep.mubr.bf16.mxu1 %v4443_v3 }
   0x2   :  { %5253 = sst [smem:[#allocation3_spill]] %s5233_s3  ;;  %v4560_v4 = vld [vmem:[%s5240_s10 + $0x18] sm:$0xff]  ;;  %v64_v9 = vld [vmem:[%s5249_s0] sm:$0xff]  ;;  %v65_v10 = vld [vmem:[%s5249_s0 + $0x8] sm:$0xff]  ;;  %v77_v16 = vshrl.u32 %v76_v15, 7 }
   0x3   :  { %5254 = sst [smem:[#allocation4_spill]] %s5234_s4  ;;  %s5255_s4 = sld [smem:[#allocation2_spill]]  ;;  %v66_v11 = vld [vmem:[%s5249_s0 + $0x10] sm:$0xff]  ;;  %v67_v12 = vld [vmem:[%s5249_s0 + $0x18] sm:$0xff]  ;;  %v72_v13 = vpack.c.bf16 %v65_v10, %v64_v9  ;;  %v74_v18 = vld [vmem:[%s5250_s2] sm:$0x3] }
   0x4   :  { %v73_v14 = vpack.c.bf16 %v67_v12, %v66_v11  ;;  %v4588_v17 = vsub.s32 0, %v77_v16  ;;  %v4593_v19 = vsub.s32 1, %v77_v16  ;;  %s4613_s0 = smov 0  }
   0x6   :  { %v79_v20 = vrot.slane %v74_v18, %v4588_v17  ;;  %v83_v21 = vrot.slane %v74_v18, %v4593_v19 }
   0x9   :  { %v4009_v5 = vld [vmem:[%s5255_s4 + $0x4] ss:$8 sps:$4 sm:$0xff]   ;;  %v4011_v6 = vld [vmem:[%s5255_s4] ss:$8 sps:$4 sm:$0xff]   ;;  %v4012_v7 = vld [vmem:[%s5255_s4 + $0x14] ss:$8 sps:$4 sm:$0xff]  }
   0xa   :  { %113 = vmatprep.subr.bf16.mxu0 %v4009_v5  ;;  %3817 = vmatprep.subr.bf16.mxu1 %v4009_v5  ;;  %v4014_v8 = vld [vmem:[%s5255_s4 + $0x10] ss:$8 sps:$4 sm:$0xff]  }
   0xb   :  { %114 = vmatpush1.bf16.msra.mxu0 %v4011_v6  ;;  %3819 = vmatpush1.bf16.msra.mxu1 %v4011_v6 }
   0xc   :  { %115 = vmatprep.subr.bf16.mxu0 %v4012_v7  ;;  %3818 = vmatprep.subr.bf16.mxu1 %v4012_v7 }
   0xf   :  { %116 = vmatpush1.bf16.msra.mxu0 %v4014_v8  ;;  %3820 = vmatpush1.bf16.msra.mxu1 %v4014_v8 }
  0x12   :  { %3227 = vmatmul.mubr.msk.bf16.vlgmr.msra.gmra.mrb[0].mxu0 %vm106_vm0, %v72_v13  ;;  %3228 = vmatmul.mubr.msk.bf16.vlgmr.msra.gmra.mrb[0].mxu1 %vm106_vm0, %v73_v14 }
  0xe5   :  { %v147_v22 = vpop.f32.mrb[0].mxu0  ;;  %v157_v23 = vpop.f32.mrb[0].mxu1 }
  0xe6   :  { %v148_v24 = vadd.f32 %v147_v22, %v79_v20   ;;  %v158_v25 = vadd.f32 %v157_v23, %v79_v20   ;;  %v149_v26 = vpop.f32.mrb[1].mxu0  ;;  %v159_v27 = vpop.f32.mrb[1].mxu1 }
  0xe7   :  { %v150_v28 = vadd.f32 %v149_v26, %v83_v21   ;;  %v160_v29 = vadd.f32 %v159_v27, %v83_v21   ;;  %v151_v30 = vpop.f32.mrb[2].mxu0  ;;  %v161_v31 = vpop.f32.mrb[2].mxu1 }
  0xe8   :  { %v152_v32 = vadd.f32 %v151_v30, %v79_v20   ;;  %v162_v33 = vadd.f32 %v161_v31, %v79_v20   ;;  %v153_v34 = vpop.f32.mrb[3].mxu0  ;;  %v163_v35 = vpop.f32.mrb[3].mxu1 }
  0xe9   :  { %v154_v36 = vadd.f32 %v153_v34, %v83_v21   ;;  %v164_v37 = vadd.f32 %v163_v35, %v83_v21  }
  0xea LB: > { %s3597_s2 = sshll.u32 %s4401_s0, 8  ;;  %v216_v38 = vpack.c.bf16 %v4385_v36, %v4393_v28  ;;  %s5256_s25 = sld [smem:[#allocation3_spill]]  ;;  %v215_v13 = vpack.c.bf16 %v4389_v32, %v4397_v24  ;;  %v218_v14 = vpack.c.bf16 %v4369_v37, %v4377_v29  ;;  %v217_v21 = vpack.c.bf16 %v4373_v33, %v4381_v25  ;;  %s4401_s0 = sphi %s4613_s0, %s171_s0   ;;  %v4397_v24 = vphi %v148_v24, %v5268_v24   ;;  %v4393_v28 = vphi %v150_v28, %v5267_v28   ;;  %v4389_v32 = vphi %v152_v32, %v5266_v32   ;;  %v4385_v36 = vphi %v154_v36, %v5265_v36   ;;  %v4381_v25 = vphi %v158_v25, %v5264_v25   ;;  %v4377_v29 = vphi %v160_v29, %v5263_v29   ;;  %v4373_v33 = vphi %v162_v33, %v5262_v33   ;;  %v4369_v37 = vphi %v164_v37, %v5261_v37  }
  0xeb   : > { %s3599_s27 = smul.u32 768, %s4401_s0  ;;  %s3231_s20 = sshll.u32 %s4401_s0, 1 }
  0xec   : > { %425 = vmatprep.mubr.bf16.mxu0 %v216_v38  ;;  %s3598_s30 = smul.u32 48, %s4401_s0  ;;  %s5257_s4 = sld [smem:[#allocation4_spill]] }
  0xed   : > { %s4666_s29 = scalar_lea.vmem %s5236_s6, %s3599_s27  ;;  %s171_s0 = sadd.s32 1, %s4401_s0  }
  0xee   : > { %v4065_v12 = vld [vmem:[%s4666_s29 + $0x104] ss:$8 sps:$4 sm:$0xff]   ;;  %v4063_v15 = vld [vmem:[%s4666_s29 + $0x100] ss:$8 sps:$4 sm:$0xff]   ;;  %v4068_v16 = vld [vmem:[%s4666_s29 + $0x114] ss:$8 sps:$4 sm:$0xff]   ;;  %s4730_s3 = scalar_lea.vmem %s5235_s5, %s3598_s30 }
  0xef   : > { %v4066_v18 = vld [vmem:[%s4666_s29 + $0x110] ss:$8 sps:$4 sm:$0xff]   ;;  %v4071_v20 = vld [vmem:[%s4666_s29 + $0x124] ss:$8 sps:$4 sm:$0xff]   ;;  %v4069_v22 = vld [vmem:[%s4666_s29 + $0x120] ss:$8 sps:$4 sm:$0xff]  }
  0xf0   : > { %s4648_s26 = scalar_lea.vmem %s5256_s25, %s3597_s2  ;;  %v4074_v23 = vld [vmem:[%s4666_s29 + $0x134] ss:$8 sps:$4 sm:$0xff]   ;;  %v4072_v26 = vld [vmem:[%s4666_s29 + $0x130] ss:$8 sps:$4 sm:$0xff]   ;;  %v4077_v27 = vld [vmem:[%s4666_s29 + $0x144] ss:$8 sps:$4 sm:$0xff]   ;;  %s1450_s25 = scalar_lea.vmem %s5237_s7, %s3231_s20 }
  0xf1   : > { %v4015_v39 = vld [vmem:[%s4648_s26 + $0x4] ss:$8 sps:$4 sm:$0xff]   ;;  %v4017_v40 = vld [vmem:[%s4648_s26] ss:$8 sps:$4 sm:$0xff]   ;;  %v4018_v41 = vld [vmem:[%s4648_s26 + $0x14] ss:$8 sps:$4 sm:$0xff]  }
  0xf2   : > { %393 = vmatprep.subr.bf16.mxu0 %v4015_v39  ;;  %v4020_v42 = vld [vmem:[%s4648_s26 + $0x10] ss:$8 sps:$4 sm:$0xff]   ;;  %v4021_v43 = vld [vmem:[%s4648_s26 + $0x24] ss:$8 sps:$4 sm:$0xff]   ;;  %v4023_v44 = vld [vmem:[%s4648_s26 + $0x20] ss:$8 sps:$4 sm:$0xff]   ;;  %s220_s2 = scalar_lea.vmem %s5257_s4, %s3231_s20 }
  0xf3   : > { %394 = vmatpush1.bf16.msra.mxu0 %v4017_v40  ;;  %v4024_v45 = vld [vmem:[%s4648_s26 + $0x34] ss:$8 sps:$4 sm:$0xff]   ;;  %v4026_v46 = vld [vmem:[%s4648_s26 + $0x30] ss:$8 sps:$4 sm:$0xff]   ;;  %v4027_v47 = vld [vmem:[%s4648_s26 + $0x44] ss:$8 sps:$4 sm:$0xff]  }
  0xf4   : > { %395 = vmatprep.subr.bf16.mxu0 %v4018_v41  ;;  %v4029_v48 = vld [vmem:[%s4648_s26 + $0x40] ss:$8 sps:$4 sm:$0xff]   ;;  %v4030_v49 = vld [vmem:[%s4648_s26 + $0x54] ss:$8 sps:$4 sm:$0xff]   ;;  %v4032_v50 = vld [vmem:[%s4648_s26 + $0x50] ss:$8 sps:$4 sm:$0xff]  }
  0xf5   : > { %v4033_v51 = vld [vmem:[%s4648_s26 + $0x64] ss:$8 sps:$4 sm:$0xff]   ;;  %v4035_v52 = vld [vmem:[%s4648_s26 + $0x60] ss:$8 sps:$4 sm:$0xff]   ;;  %v4036_v53 = vld [vmem:[%s4648_s26 + $0x74] ss:$8 sps:$4 sm:$0xff]  }
  0xf6   : > { %v4038_v54 = vld [vmem:[%s4648_s26 + $0x70] ss:$8 sps:$4 sm:$0xff]   ;;  %v4039_v55 = vld [vmem:[%s4648_s26 + $0x84] ss:$8 sps:$4 sm:$0xff]   ;;  %v4041_v56 = vld [vmem:[%s4648_s26 + $0x80] ss:$8 sps:$4 sm:$0xff]  }
  0xf7   : > { %396 = vmatpush1.bf16.msra.mxu0 %v4020_v42  ;;  %v4042_v57 = vld [vmem:[%s4648_s26 + $0x94] ss:$8 sps:$4 sm:$0xff]   ;;  %v4044_v58 = vld [vmem:[%s4648_s26 + $0x90] ss:$8 sps:$4 sm:$0xff]   ;;  %v4045_v59 = vld [vmem:[%s4648_s26 + $0xa4] ss:$8 sps:$4 sm:$0xff]  }
  0xf8   : > { %397 = vmatprep.subr.bf16.mxu0 %v4021_v43  ;;  %v4047_v60 = vld [vmem:[%s4648_s26 + $0xa0] ss:$8 sps:$4 sm:$0xff]   ;;  %v4048_v61 = vld [vmem:[%s4648_s26 + $0xb4] ss:$8 sps:$4 sm:$0xff]   ;;  %v4050_v62 = vld [vmem:[%s4648_s26 + $0xb0] ss:$8 sps:$4 sm:$0xff]  }
  0xf9   : > { %v4051_v63 = vld [vmem:[%s4648_s26 + $0xc4] ss:$8 sps:$4 sm:$0xff]   ;;  %v4053_v5 = vld [vmem:[%s4648_s26 + $0xc0] ss:$8 sps:$4 sm:$0xff]   ;;  %v4054_v6 = vld [vmem:[%s4648_s26 + $0xd4] ss:$8 sps:$4 sm:$0xff]  }
  0xfa   : > { %v4056_v7 = vld [vmem:[%s4648_s26 + $0xd0] ss:$8 sps:$4 sm:$0xff]   ;;  %v4057_v8 = vld [vmem:[%s4648_s26 + $0xe4] ss:$8 sps:$4 sm:$0xff]   ;;  %v4059_v9 = vld [vmem:[%s4648_s26 + $0xe0] ss:$8 sps:$4 sm:$0xff]  }
  0xfb   : > { %398 = vmatpush1.bf16.msra.mxu0 %v4023_v44  ;;  %v4060_v10 = vld [vmem:[%s4648_s26 + $0xf4] ss:$8 sps:$4 sm:$0xff]   ;;  %v4062_v11 = vld [vmem:[%s4648_s26 + $0xf0] ss:$8 sps:$4 sm:$0xff]   ;;  %v4075_v30 = vld [vmem:[%s4666_s29 + $0x140] ss:$8 sps:$4 sm:$0xff]  }
  0xfc   : > { %399 = vmatprep.subr.bf16.mxu0 %v4024_v45  ;;  %v4080_v31 = vld [vmem:[%s4666_s29 + $0x154] ss:$8 sps:$4 sm:$0xff]   ;;  %v4078_v34 = vld [vmem:[%s4666_s29 + $0x150] ss:$8 sps:$4 sm:$0xff]   ;;  %v4083_v35 = vld [vmem:[%s4666_s29 + $0x164] ss:$8 sps:$4 sm:$0xff]  }
  0xfd   : > { %v4081_v38 = vld [vmem:[%s4666_s29 + $0x160] ss:$8 sps:$4 sm:$0xff]   ;;  %v4086_v39 = vld [vmem:[%s4666_s29 + $0x174] ss:$8 sps:$4 sm:$0xff]   ;;  %v4084_v40 = vld [vmem:[%s4666_s29 + $0x170] ss:$8 sps:$4 sm:$0xff]  }
  0xfe   : > { %v4089_v41 = vld [vmem:[%s4666_s29 + $0x184] ss:$8 sps:$4 sm:$0xff]   ;;  %v4087_v42 = vld [vmem:[%s4666_s29 + $0x180] ss:$8 sps:$4 sm:$0xff]   ;;  %v4092_v43 = vld [vmem:[%s4666_s29 + $0x194] ss:$8 sps:$4 sm:$0xff]  }
  0xff   : > { %400 = vmatpush1.bf16.msra.mxu0 %v4026_v46  ;;  %v4090_v44 = vld [vmem:[%s4666_s29 + $0x190] ss:$8 sps:$4 sm:$0xff]   ;;  %v4095_v45 = vld [vmem:[%s4666_s29 + $0x1a4] ss:$8 sps:$4 sm:$0xff]   ;;  %v4093_v46 = vld [vmem:[%s4666_s29 + $0x1a0] ss:$8 sps:$4 sm:$0xff]  }
 0x100   : > { %401 = vmatprep.subr.bf16.mxu0 %v4027_v47  ;;  %v4098_v47 = vld [vmem:[%s4666_s29 + $0x1b4] ss:$8 sps:$4 sm:$0xff]   ;;  %p168_p0 = scmp.ge.s32.totalorder %s171_s0, 10  }
 0x101   :  { %4213 = vset.pattern.permute.xlu0 (%p168_p0), %v4443_v3  ;;  %4214 = vset.pattern.permute.xlu1 (%p168_p0), %v4443_v3  ;;  %v4220_v3 = vld [vmem:[%s5238_s8 + $0x10] sm:$0xff] (%p168_p0)   ;;  %vm1699_vm1 = vcmask (%p168_p0), 48128   ;;  %vm1768_vm2 = vcmask (%p168_p0), 1042432   ;;  %s4998_s28 = smov (%p168_p0), 0  }
 0x102   :  { %1677 = vperm.xlu0 (%p168_p0), %4213, %v4543_v0   ;;  %1687 = vperm.xlu1 (%p168_p0), %4214, %v4553_v2   ;;  %v4219_v0 = vld [vmem:[%s5238_s8 + $0x50] sm:$0xff] (%p168_p0)   ;;  %v4222_v2 = vld [vmem:[%s5238_s8 + $0x18] sm:$0xff] (%p168_p0)  }
 0x103   : > { %402 = vmatpush1.bf16.msra.mxu0 %v4029_v48  ;;  %v4096_v48 = vld [vmem:[%s4666_s29 + $0x1b0] ss:$8 sps:$4 sm:$0xff]  }
 0x104   : > { %403 = vmatprep.subr.bf16.mxu0 %v4030_v49  ;;  %v4101_v49 = vld [vmem:[%s4666_s29 + $0x1c4] ss:$8 sps:$4 sm:$0xff]  }
 0x106   :  { %1682 = vperm.xlu0 (%p168_p0), %4213, %v4548_v1   ;;  %1692 = vperm.xlu1 (%p168_p0), %4214, %v4560_v4   ;;  %v4223_v1 = vld [vmem:[%s5238_s8 + $0x60] sm:$0xff] (%p168_p0)  }
 0x107   : > { %404 = vmatpush1.bf16.msra.mxu0 %v4032_v50  ;;  %v4099_v50 = vld [vmem:[%s4666_s29 + $0x1c0] ss:$8 sps:$4 sm:$0xff]  }
 0x108   : > { %405 = vmatprep.subr.bf16.mxu0 %v4033_v51  ;;  %v4104_v51 = vld [vmem:[%s4666_s29 + $0x1d4] ss:$8 sps:$4 sm:$0xff]   ;;  %v4224_v4 = vld [vmem:[%s5238_s8 + $0x20] sm:$0xff] (%p168_p0)  }
 0x10b   : > { %406 = vmatpush1.bf16.msra.mxu0 %v4035_v52  ;;  %v4102_v52 = vld [vmem:[%s4666_s29 + $0x1d0] ss:$8 sps:$4 sm:$0xff]  }
 0x10c   : > { %407 = vmatprep.subr.bf16.mxu0 %v4036_v53  ;;  %v4107_v53 = vld [vmem:[%s4666_s29 + $0x1e4] ss:$8 sps:$4 sm:$0xff]  }
 0x10f   : > { %408 = vmatpush1.bf16.msra.mxu0 %v4038_v54  ;;  %v4105_v54 = vld [vmem:[%s4666_s29 + $0x1e0] ss:$8 sps:$4 sm:$0xff]  }
 0x110   : > { %409 = vmatprep.subr.bf16.mxu0 %v4039_v55  ;;  %v4110_v55 = vld [vmem:[%s4666_s29 + $0x1f4] ss:$8 sps:$4 sm:$0xff]  }
 0x113   : > { %410 = vmatpush1.bf16.msra.mxu0 %v4041_v56  ;;  %v4108_v56 = vld [vmem:[%s4666_s29 + $0x1f0] ss:$8 sps:$4 sm:$0xff]  }
 0x114   : > { %411 = vmatprep.subr.bf16.mxu0 %v4042_v57  ;;  %v4444_v57 = vmov 0  }
 0x115   : > { %513 = vmatprep.mubr.bf16.mxu1 %v4444_v57 }
 0x117   : > { %412 = vmatpush1.bf16.msra.mxu0 %v4044_v58  ;;  %v221_v58 = vld [vmem:[%s220_s2] sm:$0x3] }
 0x118   : > { %413 = vmatprep.subr.bf16.mxu0 %v4045_v59  ;;  %v226_v59 = vrot.slane %v221_v58, %v4588_v17 }
 0x11b   : > { %414 = vmatpush1.bf16.msra.mxu0 %v4047_v60  ;;  %v230_v60 = vrot.slane %v221_v58, %v4593_v19  ;;  %v4133_v58 = vld [vmem:[%s4666_s29 + $0x60] ss:$8 sps:$4 sm:$0xff]  }
 0x11c   : > { %415 = vmatprep.subr.bf16.mxu0 %v4048_v61 }
 0x11f   : > { %416 = vmatpush1.bf16.msra.mxu0 %v4050_v62 }
 0x120   : > { %417 = vmatprep.subr.bf16.mxu0 %v4051_v63 }
 0x123   : > { %418 = vmatpush1.bf16.msra.mxu0 %v4053_v5 }
 0x124   : > { %419 = vmatprep.subr.bf16.mxu0 %v4054_v6 }
 0x127   : > { %420 = vmatpush1.bf16.msra.mxu0 %v4056_v7 }
 0x128   : > { %421 = vmatprep.subr.bf16.mxu0 %v4057_v8 }
 0x12b   : > { %422 = vmatpush1.bf16.msra.mxu0 %v4059_v9 }
 0x12c   : > { %423 = vmatprep.subr.bf16.mxu0 %v4060_v10 }
 0x12f   : > { %424 = vmatpush1.bf16.msra.mxu0 %v4062_v11 }
 0x130   : > { %848 = vmatprep.subr.bf16.mxu0 %v4065_v12 }
 0x132   : > { %426 = vmatmul.mubr.bf16.vlgmr.msra.gmra.mrb[0].mxu0 %v215_v13 }
 0x133   : > { %435 = vmatprep.mubr.bf16.mxu0 %v218_v14  ;;  %849 = vmatpush1.bf16.msra.mxu0 %v4063_v15 }
 0x134   : > { %850 = vmatprep.subr.bf16.mxu0 %v4068_v16 }
 0x137   : > { %851 = vmatpush1.bf16.msra.mxu0 %v4066_v18 }
 0x138   : > { %852 = vmatprep.subr.bf16.mxu0 %v4071_v20 }
 0x13a   : > { %436 = vmatmul.mubr.bf16.gmra.mrb[4].mxu0 %v217_v21 }
 0x13b   : > { %853 = vmatpush1.bf16.msra.mxu0 %v4069_v22 }
 0x13c   : > { %854 = vmatprep.subr.bf16.mxu0 %v4074_v23 }
 0x13f   : > { %855 = vmatpush1.bf16.msra.mxu0 %v4072_v26 }
 0x140   : > { %856 = vmatprep.subr.bf16.mxu0 %v4077_v27 }
 0x143   : > { %857 = vmatpush1.bf16.msra.mxu0 %v4075_v30 }
 0x144   : > { %858 = vmatprep.subr.bf16.mxu0 %v4080_v31 }
 0x147   : > { %859 = vmatpush1.bf16.msra.mxu0 %v4078_v34 }
 0x148   : > { %860 = vmatprep.subr.bf16.mxu0 %v4083_v35 }
 0x14b   : > { %861 = vmatpush1.bf16.msra.mxu0 %v4081_v38 }
 0x14c   : > { %862 = vmatprep.subr.bf16.mxu0 %v4086_v39 }
 0x14f   : > { %863 = vmatpush1.bf16.msra.mxu0 %v4084_v40  ;;  %v4111_v40 = vld [vmem:[%s4730_s3] sm:$0xff]  }
 0x150   : > { %864 = vmatprep.subr.bf16.mxu0 %v4089_v41  ;;  %v4117_v41 = vld [vmem:[%s4666_s29 + $0x4] ss:$8 sps:$4 sm:$0xff]  }
 0x153   : > { %865 = vmatpush1.bf16.msra.mxu0 %v4087_v42  ;;  %v4112_v42 = vld [vmem:[%s4730_s3 + $0x8] sm:$0xff]  }
 0x154   : > { %866 = vmatprep.subr.bf16.mxu0 %v4092_v43  ;;  %v4113_v43 = vld [vmem:[%s4730_s3 + $0x10] sm:$0xff]  }
 0x157   : > { %867 = vmatpush1.bf16.msra.mxu0 %v4090_v44  ;;  %v4115_v44 = vld [vmem:[%s4666_s29] ss:$8 sps:$4 sm:$0xff]  }
 0x158   : > { %868 = vmatprep.subr.bf16.mxu0 %v4095_v45  ;;  %v4120_v45 = vld [vmem:[%s4666_s29 + $0x14] ss:$8 sps:$4 sm:$0xff]  }
 0x15b   : > { %869 = vmatpush1.bf16.msra.mxu0 %v4093_v46  ;;  %v4118_v46 = vld [vmem:[%s4666_s29 + $0x10] ss:$8 sps:$4 sm:$0xff]  }
 0x15c   : > { %870 = vmatprep.subr.bf16.mxu0 %v4098_v47  ;;  %v4123_v47 = vld [vmem:[%s4666_s29 + $0x24] ss:$8 sps:$4 sm:$0xff]  }
 0x15f   : > { %871 = vmatpush1.bf16.msra.mxu0 %v4096_v48  ;;  %v4114_v48 = vld [vmem:[%s4730_s3 + $0x18] sm:$0xff]  }
 0x160   : > { %872 = vmatprep.subr.bf16.mxu0 %v4101_v49  ;;  %v4121_v49 = vld [vmem:[%s4666_s29 + $0x20] ss:$8 sps:$4 sm:$0xff]  }
 0x163   : > { %873 = vmatpush1.bf16.msra.mxu0 %v4099_v50  ;;  %v4126_v50 = vld [vmem:[%s4666_s29 + $0x34] ss:$8 sps:$4 sm:$0xff]  }
 0x164   : > { %874 = vmatprep.subr.bf16.mxu0 %v4104_v51  ;;  %v4124_v51 = vld [vmem:[%s4666_s29 + $0x30] ss:$8 sps:$4 sm:$0xff]  }
 0x167   : > { %875 = vmatpush1.bf16.msra.mxu0 %v4102_v52  ;;  %v4129_v52 = vld [vmem:[%s4666_s29 + $0x44] ss:$8 sps:$4 sm:$0xff]  }
 0x168   : > { %876 = vmatprep.subr.bf16.mxu0 %v4107_v53  ;;  %v4127_v53 = vld [vmem:[%s4666_s29 + $0x40] ss:$8 sps:$4 sm:$0xff]  }
 0x16b   : > { %877 = vmatpush1.bf16.msra.mxu0 %v4105_v54  ;;  %v4132_v54 = vld [vmem:[%s4666_s29 + $0x54] ss:$8 sps:$4 sm:$0xff]  }
 0x16c   : > { %878 = vmatprep.subr.bf16.mxu0 %v4110_v55  ;;  %v4130_v55 = vld [vmem:[%s4666_s29 + $0x50] ss:$8 sps:$4 sm:$0xff]  }
 0x16f   : > { %879 = vmatpush1.bf16.msra.mxu0 %v4108_v56  ;;  %v4135_v56 = vld [vmem:[%s4666_s29 + $0x64] ss:$8 sps:$4 sm:$0xff]  }
 0x205   : > { %v427_v61 = vpop.f32.mrb[0].mxu0 }
 0x206   : > { %v428_v62 = vadd.f32 %v427_v61, %v226_v59  ;;  %v429_v63 = vpop.f32.mrb[1].mxu0  ;;  %v4141_v61 = vld [vmem:[%s4666_s29 + $0x84] ss:$8 sps:$4 sm:$0xff]  }
 0x207   : > { %v430_v5 = vadd.f32 %v429_v63, %v230_v60  ;;  %v431_v6 = vpop.f32.mrb[2].mxu0  ;;  %v4144_v63 = vld [vmem:[%s4666_s29 + $0x94] ss:$8 sps:$4 sm:$0xff]  }
 0x208   : > { %v432_v7 = vadd.f32 %v431_v6, %v226_v59  ;;  %v433_v8 = vpop.f32.mrb[3].mxu0  ;;  %v446_v10 = vmax.f32 %v428_v62, 0.0  ;;  %v4139_v62 = vld [vmem:[%s4666_s29 + $0x80] ss:$8 sps:$4 sm:$0xff]   ;;  %v4147_v6 = vld [vmem:[%s4666_s29 + $0xa4] ss:$8 sps:$4 sm:$0xff]  }
 0x209   : > { %v434_v9 = vadd.f32 %v433_v8, %v230_v60  ;;  %v447_v12 = vmax.f32 %v430_v5, 0.0  ;;  %v4142_v5 = vld [vmem:[%s4666_s29 + $0x90] ss:$8 sps:$4 sm:$0xff]   ;;  %v4150_v8 = vld [vmem:[%s4666_s29 + $0xb4] ss:$8 sps:$4 sm:$0xff]  }
 0x20a   : > { %v448_v11 = vmax.f32 %v432_v7, 0.0  ;;  %v4145_v7 = vld [vmem:[%s4666_s29 + $0xa0] ss:$8 sps:$4 sm:$0xff]  }
 0x20b   : > { %v449_v13 = vmax.f32 %v434_v9, 0.0  ;;  %v4148_v9 = vld [vmem:[%s4666_s29 + $0xb0] ss:$8 sps:$4 sm:$0xff]  }
 0x20c   : > { %v4741_v14 = vpack.c.bf16 %v448_v11, %v446_v10  ;;  %v4153_v10 = vld [vmem:[%s4666_s29 + $0xc4] ss:$8 sps:$4 sm:$0xff]   ;;  %v4151_v11 = vld [vmem:[%s4666_s29 + $0xc0] ss:$8 sps:$4 sm:$0xff]  }
 0x20d   : > { %v462_v15 = vpack.c.bf16 %v449_v13, %v447_v12  ;;  %v437_v16 = vpop.f32.mrb[4].mxu0  ;;  %v4156_v12 = vld [vmem:[%s4666_s29 + $0xd4] ss:$8 sps:$4 sm:$0xff]   ;;  %v4154_v13 = vld [vmem:[%s4666_s29 + $0xd0] ss:$8 sps:$4 sm:$0xff]  }
 0x20e   : > { %v438_v18 = vadd.f32 %v437_v16, %v226_v59  ;;  %v439_v20 = vpop.f32.mrb[5].mxu0  ;;  %v4157_v16 = vld [vmem:[%s4666_s29 + $0xe0] ss:$8 sps:$4 sm:$0xff]  }
 0x20f   : > { %v440_v21 = vadd.f32 %v439_v20, %v230_v60  ;;  %v441_v22 = vpop.f32.mrb[6].mxu0  ;;  %481 = vmatprep.subr.bf16.mxu1 %v462_v15  ;;  %1137 = vmatprep.subr.bf16.mxu0 %v462_v15  ;;  %v4160_v20 = vld [vmem:[%s4666_s29 + $0xf0] ss:$8 sps:$4 sm:$0xff]  }
 0x210   : > { %v442_v23 = vadd.f32 %v441_v22, %v226_v59  ;;  %v443_v26 = vpop.f32.mrb[7].mxu0  ;;  %482 = vmatpush1.bf16.msra.mxu1 %v4741_v14  ;;  %v450_v30 = vmax.f32 %v438_v18, 0.0  ;;  %v4138_v59 = vld [vmem:[%s4666_s29 + $0x74] ss:$8 sps:$4 sm:$0xff]  }
 0x211   : > { %v444_v27 = vadd.f32 %v443_v26, %v230_v60  ;;  %v451_v34 = vmax.f32 %v440_v21, 0.0  ;;  %v4136_v60 = vld [vmem:[%s4666_s29 + $0x70] ss:$8 sps:$4 sm:$0xff]   ;;  %v4162_v18 = vld [vmem:[%s4666_s29 + $0xf4] ss:$8 sps:$4 sm:$0xff]  }
 0x212   : > { %v452_v31 = vmax.f32 %v442_v23, 0.0  ;;  %v4167_v21 = vld [vmem:[%s4666_s29 + $0x204] ss:$8 sps:$4 sm:$0xff]  }
 0x213   : > { %v453_v35 = vmax.f32 %v444_v27, 0.0 }
 0x214   : > { %v4744_v38 = vpack.c.bf16 %v452_v31, %v450_v30 }
 0x215   : > { %v4746_v39 = vpack.c.bf16 %v453_v35, %v451_v34  ;;  %v4165_v34 = vld [vmem:[%s4666_s29 + $0x200] ss:$8 sps:$4 sm:$0xff]   ;;  %v4170_v35 = vld [vmem:[%s4666_s29 + $0x214] ss:$8 sps:$4 sm:$0xff]  }
 0x217   : > { %483 = vmatprep.subr.bf16.mxu1 %v4746_v39 }
 0x218   : > { %484 = vmatpush1.bf16.msra.mxu1 %v4744_v38 }
 0x219   : > { %596 = vmatprep.subr.bf16.mxu1 %v462_v15  ;;  %v4159_v15 = vld [vmem:[%s4666_s29 + $0xe4] ss:$8 sps:$4 sm:$0xff]  }
 0x21b   : > { %3267 = vmatmul.mubr.msk.bf16.vlgmr.msra.gmra.mrb[0].mxu1 %vm106_vm0, %v4111_v40 }
 0x21c   : > { %597 = vmatpush1.bf16.msra.mxu1 %v4741_v14  ;;  %523 = vmatprep.mubr.bf16.mxu1 %v4444_v57 }
 0x21d   : > { %598 = vmatprep.subr.bf16.mxu1 %v4746_v39 }
 0x220   : > { %599 = vmatpush1.bf16.msra.mxu1 %v4744_v38 }
 0x221   : > { %1061 = vmatprep.subr.bf16.mxu1 %v4117_v41  ;;  %v4168_v41 = vld [vmem:[%s4666_s29 + $0x210] ss:$8 sps:$4 sm:$0xff]  }
 0x223   : > { %3268 = vmatmul.mubr.msk.bf16.gmra.mrb[4].mxu1 %vm106_vm0, %v4112_v42 }
 0x224   : > { %628 = vmatprep.mubr.bf16.mxu1 %v4444_v57 }
 0x22b   : > { %3277 = vmatmul.mubr.msk.bf16.vlgmr.msra.gmra.mrb[8].mxu1 %vm106_vm0, %v4113_v43  ;;  %v4173_v43 = vld [vmem:[%s4666_s29 + $0x224] ss:$8 sps:$4 sm:$0xff]  }
 0x22c   : > { %638 = vmatprep.mubr.bf16.mxu1 %v4444_v57  ;;  %1062 = vmatpush1.bf16.msra.mxu1 %v4115_v44 }
 0x22d   : > { %1063 = vmatprep.subr.bf16.mxu1 %v4120_v45 }
 0x230   : > { %1064 = vmatpush1.bf16.msra.mxu1 %v4118_v46 }
 0x231   : > { %1065 = vmatprep.subr.bf16.mxu1 %v4123_v47 }
 0x233   : > { %3278 = vmatmul.mubr.msk.bf16.gmra.mrb[12].mxu1 %vm106_vm0, %v4114_v48  ;;  %v4171_v48 = vld [vmem:[%s4666_s29 + $0x220] ss:$8 sps:$4 sm:$0xff]  }
 0x234   : > { %1066 = vmatpush1.bf16.msra.mxu1 %v4121_v49  ;;  %v4176_v49 = vld [vmem:[%s4666_s29 + $0x234] ss:$8 sps:$4 sm:$0xff]  }
 0x235   : > { %1067 = vmatprep.subr.bf16.mxu1 %v4126_v50 }
 0x238   : > { %1068 = vmatpush1.bf16.msra.mxu1 %v4124_v51  ;;  %v4174_v51 = vld [vmem:[%s4666_s29 + $0x230] ss:$8 sps:$4 sm:$0xff]  }
 0x239   : > { %1069 = vmatprep.subr.bf16.mxu1 %v4129_v52 }
 0x23c   : > { %1070 = vmatpush1.bf16.msra.mxu1 %v4127_v53  ;;  %v4179_v53 = vld [vmem:[%s4666_s29 + $0x244] ss:$8 sps:$4 sm:$0xff]  }
 0x23d   : > { %1071 = vmatprep.subr.bf16.mxu1 %v4132_v54 }
 0x240   : > { %1072 = vmatpush1.bf16.msra.mxu1 %v4130_v55 }
 0x241   : > { %1073 = vmatprep.subr.bf16.mxu1 %v4135_v56 }
 0x244   : > { %1074 = vmatpush1.bf16.msra.mxu1 %v4133_v58 }
 0x245   : > { %1075 = vmatprep.subr.bf16.mxu1 %v4138_v59  ;;  %v4177_v59 = vld [vmem:[%s4666_s29 + $0x240] ss:$8 sps:$4 sm:$0xff]  }
 0x248   : > { %1076 = vmatpush1.bf16.msra.mxu1 %v4136_v60  ;;  %v4182_v60 = vld [vmem:[%s4666_s29 + $0x254] ss:$8 sps:$4 sm:$0xff]  }
 0x249   : > { %1077 = vmatprep.subr.bf16.mxu1 %v4141_v61 }
 0x24c   : > { %1078 = vmatpush1.bf16.msra.mxu1 %v4139_v62  ;;  %v4180_v62 = vld [vmem:[%s4666_s29 + $0x250] ss:$8 sps:$4 sm:$0xff]  }
 0x24d   : > { %1079 = vmatprep.subr.bf16.mxu1 %v4144_v63 }
 0x250   : > { %1080 = vmatpush1.bf16.msra.mxu1 %v4142_v5  ;;  %v4185_v5 = vld [vmem:[%s4666_s29 + $0x264] ss:$8 sps:$4 sm:$0xff]  }
 0x251   : > { %1081 = vmatprep.subr.bf16.mxu1 %v4147_v6 }
 0x254   : > { %1082 = vmatpush1.bf16.msra.mxu1 %v4145_v7 }
 0x255   : > { %1083 = vmatprep.subr.bf16.mxu1 %v4150_v8 }
 0x258   : > { %1084 = vmatpush1.bf16.msra.mxu1 %v4148_v9 }
 0x259   : > { %1085 = vmatprep.subr.bf16.mxu1 %v4153_v10  ;;  %v4188_v10 = vld [vmem:[%s4666_s29 + $0x274] ss:$8 sps:$4 sm:$0xff]  }
 0x25c   : > { %1086 = vmatpush1.bf16.msra.mxu1 %v4151_v11  ;;  %v4191_v11 = vld [vmem:[%s4666_s29 + $0x284] ss:$8 sps:$4 sm:$0xff]  }
 0x25d   : > { %1087 = vmatprep.subr.bf16.mxu1 %v4156_v12  ;;  %v4163_v12 = vld [vmem:[%s4730_s3 + $0x20] sm:$0xff]  }
 0x260   : > { %1088 = vmatpush1.bf16.msra.mxu1 %v4154_v13  ;;  %v4194_v13 = vld [vmem:[%s4666_s29 + $0x294] ss:$8 sps:$4 sm:$0xff]  }
 0x261   : > { %1089 = vmatprep.subr.bf16.mxu1 %v4159_v15  ;;  %v4192_v15 = vld [vmem:[%s4666_s29 + $0x290] ss:$8 sps:$4 sm:$0xff]  }
 0x264   : > { %1090 = vmatpush1.bf16.msra.mxu1 %v4157_v16  ;;  %v4197_v16 = vld [vmem:[%s4666_s29 + $0x2a4] ss:$8 sps:$4 sm:$0xff]  }
 0x265   : > { %1091 = vmatprep.subr.bf16.mxu1 %v4162_v18  ;;  %v4164_v18 = vld [vmem:[%s4730_s3 + $0x28] sm:$0xff]  }
 0x268   : > { %1092 = vmatpush1.bf16.msra.mxu1 %v4160_v20  ;;  %v4195_v20 = vld [vmem:[%s4666_s29 + $0x2a0] ss:$8 sps:$4 sm:$0xff]  }
 0x269   : > { %1389 = vmatprep.subr.bf16.mxu1 %v4167_v21  ;;  %v4200_v21 = vld [vmem:[%s4666_s29 + $0x2b4] ss:$8 sps:$4 sm:$0xff]  }
 0x2ee   : > { %v515_v22 = vpop.f32.mrb[0].mxu1 }
 0x2ef   : > { %v517_v23 = vpop.f32.mrb[1].mxu1 }
 0x2f0   : > { %v519_v26 = vpop.f32.mrb[2].mxu1 }
 0x2f1   : > { %v569_v27 = vpack.c.bf16 %v519_v26, %v515_v22  ;;  %v521_v30 = vpop.f32.mrb[3].mxu1  ;;  %v4198_v22 = vld [vmem:[%s4666_s29 + $0x2b0] ss:$8 sps:$4 sm:$0xff]   ;;  %v4206_v26 = vld [vmem:[%s4666_s29 + $0x2d4] ss:$8 sps:$4 sm:$0xff]  }
 0x2f2   : > { %v570_v31 = vpack.c.bf16 %v521_v30, %v517_v23  ;;  %v4201_v23 = vld [vmem:[%s4666_s29 + $0x2c0] ss:$8 sps:$4 sm:$0xff]   ;;  %v4209_v30 = vld [vmem:[%s4666_s29 + $0x2e4] ss:$8 sps:$4 sm:$0xff]  }
 0x2f4   : > { %1093 = vmatprep.mubr.bf16.mxu1 %v570_v31  ;;  %v4207_v31 = vld [vmem:[%s4666_s29 + $0x2e0] ss:$8 sps:$4 sm:$0xff]  }
 0x2f5   : > { %1094 = vmatmul.mubr.bf16.vlgmr.msra.gmra.mrb[16].mxu1 %v569_v27  ;;  %v4204_v27 = vld [vmem:[%s4666_s29 + $0x2d0] ss:$8 sps:$4 sm:$0xff]  }
 0x2f6   : > { %v525_v40 = vpop.f32.mrb[4].mxu1  ;;  %1390 = vmatpush1.bf16.msra.mxu1 %v4165_v34  ;;  %v4212_v34 = vld [vmem:[%s4666_s29 + $0x2f4] ss:$8 sps:$4 sm:$0xff]  }
 0x2f7   : > { %v527_v42 = vpop.f32.mrb[5].mxu1  ;;  %1391 = vmatprep.subr.bf16.mxu1 %v4170_v35  ;;  %v4210_v35 = vld [vmem:[%s4666_s29 + $0x2f0] ss:$8 sps:$4 sm:$0xff]  }
 0x2f8   : > { %v529_v44 = vpop.f32.mrb[6].mxu1 }
 0x2f9   : > { %v571_v45 = vpack.c.bf16 %v529_v44, %v525_v40  ;;  %v531_v46 = vpop.f32.mrb[7].mxu1 }
 0x2fa   : > { %v572_v47 = vpack.c.bf16 %v531_v46, %v527_v42  ;;  %1392 = vmatpush1.bf16.msra.mxu1 %v4168_v41 }
 0x2fb   : > { %1393 = vmatprep.subr.bf16.mxu1 %v4173_v43 }
 0x2fc   : > { %1103 = vmatprep.mubr.bf16.mxu1 %v572_v47 }
 0x2fd   : > { %1104 = vmatmul.mubr.bf16.gmra.mrb[20].mxu1 %v571_v45 }
 0x2fe   : > { %v630_v50 = vpop.f32.mrb[8].mxu1  ;;  %1394 = vmatpush1.bf16.msra.mxu1 %v4171_v48 }
 0x2ff   : > { %v632_v52 = vpop.f32.mrb[9].mxu1  ;;  %1395 = vmatprep.subr.bf16.mxu1 %v4176_v49 }
 0x300   : > { %v634_v54 = vpop.f32.mrb[10].mxu1 }
 0x301   : > { %v684_v55 = vpack.c.bf16 %v634_v54, %v630_v50  ;;  %v636_v56 = vpop.f32.mrb[11].mxu1 }
 0x302   : > { %v685_v58 = vpack.c.bf16 %v636_v56, %v632_v52  ;;  %1396 = vmatpush1.bf16.msra.mxu1 %v4174_v51 }
 0x303   : > { %1397 = vmatprep.subr.bf16.mxu1 %v4179_v53 }
 0x304   : > { %880 = vmatprep.mubr.bf16.mxu0 %v685_v58 }
 0x305   : > { %881 = vmatmul.mubr.bf16.vlgmr.msra.gmra.mrb[8].mxu0 %v684_v55 }
 0x306   : > { %1138 = vmatpush1.bf16.msra.mxu0 %v4741_v14  ;;  %v640_v61 = vpop.f32.mrb[12].mxu1  ;;  %1398 = vmatpush1.bf16.msra.mxu1 %v4177_v59  ;;  %v4183_v14 = vld [vmem:[%s4666_s29 + $0x260] ss:$8 sps:$4 sm:$0xff]  }
 0x307   : > { %1139 = vmatprep.subr.bf16.mxu0 %v4746_v39  ;;  %v642_v63 = vpop.f32.mrb[13].mxu1  ;;  %1399 = vmatprep.subr.bf16.mxu1 %v4182_v60  ;;  %v4186_v39 = vld [vmem:[%s4666_s29 + $0x270] ss:$8 sps:$4 sm:$0xff]  }
 0x308   : > { %v644_v6 = vpop.f32.mrb[14].mxu1 }
 0x309   : > { %v686_v7 = vpack.c.bf16 %v644_v6, %v640_v61  ;;  %v646_v8 = vpop.f32.mrb[15].mxu1  ;;  %v1451_v61 = vld [vmem:[%s1450_s25] sm:$0x3] }
 0x30a   : > { %v687_v9 = vpack.c.bf16 %v646_v8, %v642_v63  ;;  %1140 = vmatpush1.bf16.msra.mxu0 %v4744_v38  ;;  %1400 = vmatpush1.bf16.msra.mxu1 %v4180_v62  ;;  %v4189_v38 = vld [vmem:[%s4666_s29 + $0x280] ss:$8 sps:$4 sm:$0xff]   ;;  %v1456_v62 = vrot.slane %v1451_v61, %v4588_v17 }
 0x30b   : > { %1401 = vmatprep.subr.bf16.mxu1 %v4185_v5  ;;  %v1460_v5 = vrot.slane %v1451_v61, %v4593_v19  ;;  %v4218_v17 = vld [vmem:[%s5238_s8 + $0x8] sm:$0xff] (%p168_p0)   ;;  %v4221_v19 = vld [vmem:[%s5238_s8 + $0x58] sm:$0xff] (%p168_p0)  }
 0x30c   : > { %890 = vmatprep.mubr.bf16.mxu0 %v687_v9 }
 0x30d   : > { %891 = vmatmul.mubr.bf16.gmra.mrb[12].mxu0 %v686_v7 }
 0x30e   : > { %1169 = vmatprep.mubr.bf16.mxu0 %v4444_v57  ;;  %1402 = vmatpush1.bf16.msra.mxu1 %v4183_v14 }
 0x30f   : > { %1403 = vmatprep.subr.bf16.mxu1 %v4188_v10 }
 0x312   : > { %1404 = vmatpush1.bf16.msra.mxu1 %v4186_v39 }
 0x313   : > { %1405 = vmatprep.subr.bf16.mxu1 %v4191_v11 }
 0x315   : > { %3383 = vmatmul.mubr.msk.bf16.vlgmr.msra.gmra.mrb[16].mxu0 %vm106_vm0, %v4163_v12 }
 0x316   : > { %1179 = vmatprep.mubr.bf16.mxu0 %v4444_v57  ;;  %1406 = vmatpush1.bf16.msra.mxu1 %v4189_v38  ;;  %v4203_v57 = vld [vmem:[%s4666_s29 + $0x2c4] ss:$8 sps:$4 sm:$0xff]  }
 0x317   : > { %1407 = vmatprep.subr.bf16.mxu1 %v4194_v13 }
 0x31a   : > { %1408 = vmatpush1.bf16.msra.mxu1 %v4192_v15 }
 0x31b   : > { %1409 = vmatprep.subr.bf16.mxu1 %v4197_v16 }
 0x31d   : > { %3384 = vmatmul.mubr.msk.bf16.gmra.mrb[20].mxu0 %vm106_vm0, %v4164_v18 }
 0x31e   : > { %1410 = vmatpush1.bf16.msra.mxu1 %v4195_v20 }
 0x31f   : > { %1411 = vmatprep.subr.bf16.mxu1 %v4200_v21 }
 0x322   : > { %1412 = vmatpush1.bf16.msra.mxu1 %v4198_v22 }
 0x323   : > { %1413 = vmatprep.subr.bf16.mxu1 %v4203_v57 }
 0x326   : > { %1414 = vmatpush1.bf16.msra.mxu1 %v4201_v23 }
 0x327   : > { %1415 = vmatprep.subr.bf16.mxu1 %v4206_v26 }
 0x32a   : > { %1416 = vmatpush1.bf16.msra.mxu1 %v4204_v27 }
 0x32b   : > { %1417 = vmatprep.subr.bf16.mxu1 %v4209_v30 }
 0x32e   : > { %1418 = vmatpush1.bf16.msra.mxu1 %v4207_v31 }
 0x32f   : > { %1419 = vmatprep.subr.bf16.mxu1 %v4212_v34 }
 0x332   : > { %1420 = vmatpush1.bf16.msra.mxu1 %v4210_v35 }
 0x3d8   : > { %v882_v40 = vpop.f32.mrb[8].mxu0 }
 0x3d9   : > { %v884_v41 = vpop.f32.mrb[9].mxu0 }
 0x3da   : > { %v886_v42 = vpop.f32.mrb[10].mxu0 }
 0x3db   : > { %v888_v43 = vpop.f32.mrb[11].mxu0 }
 0x3e0   : > { %v892_v44 = vpop.f32.mrb[12].mxu0 }
 0x3e1   : > { %v894_v45 = vpop.f32.mrb[13].mxu0 }
 0x3e2   : > { %v896_v46 = vpop.f32.mrb[14].mxu0 }
 0x3e3   : > { %v898_v47 = vpop.f32.mrb[15].mxu0 }
 0x3e8   : > { %v1171_v48 = vpop.f32.mrb[16].mxu0 }
 0x3e9   : > { %v1173_v49 = vpop.f32.mrb[17].mxu0 }
 0x3ea   : > { %v1175_v50 = vpop.f32.mrb[18].mxu0 }
 0x3eb   : > { %v1225_v51 = vpack.c.bf16 %v1175_v50, %v1171_v48  ;;  %v1177_v52 = vpop.f32.mrb[19].mxu0 }
 0x3ec   : > { %v1226_v53 = vpack.c.bf16 %v1177_v52, %v1173_v49 }
 0x3ee   : > { %1421 = vmatprep.mubr.bf16.mxu1 %v1226_v53  ;;  %v4216_v53 = vld [vmem:[%s5238_s8] sm:$0xff] (%p168_p0)  }
 0x3ef   : > { %1422 = vmatmul.mubr.bf16.vlgmr.msra.gmra.mrb[16].mxu1 %v1225_v51 }
 0x3f0   : > { %v1181_v54 = vpop.f32.mrb[20].mxu0 }
 0x3f1   : > { %v1183_v55 = vpop.f32.mrb[21].mxu0 }
 0x3f2   : > { %v1185_v56 = vpop.f32.mrb[22].mxu0 }
 0x3f3   : > { %v1227_v58 = vpack.c.bf16 %v1185_v56, %v1181_v54  ;;  %v1187_v59 = vpop.f32.mrb[23].mxu0  ;;  %v4217_v54 = vld [vmem:[%s5238_s8 + $0x48] sm:$0xff] (%p168_p0)  }
 0x3f4   : > { %v1228_v60 = vpack.c.bf16 %v1187_v59, %v1183_v55  ;;  %v4230_v55 = vld [vmem:[%s5238_s8 + $0x38] sm:$0xff] (%p168_p0)  }
 0x3f6   : > { %1431 = vmatprep.mubr.bf16.mxu1 %v1228_v60  ;;  %v4937_v60 = vpop.permute.xlu0 (%p168_p0), %1677 }
 0x3f7   : > { %1432 = vmatmul.mubr.bf16.gmra.mrb[20].mxu1 %v1227_v58 }
 0x4c2   : > { %v1423_v63 = vpop.f32.mrb[16].mxu1 }
 0x4c3   : > { %v3821_v6 = vadd.f32 %v1423_v63, %v882_v40  ;;  %v1425_v7 = vpop.f32.mrb[17].mxu1 }
 0x4c4   : > { %v3822_v8 = vadd.f32 %v1425_v7, %v884_v41  ;;  %v1427_v9 = vpop.f32.mrb[18].mxu1 }
 0x4c5   : > { %v1463_v14 = vadd.f32 %v3821_v6, %v1456_v62  ;;  %v3823_v10 = vadd.f32 %v1427_v9, %v886_v42  ;;  %v1429_v39 = vpop.f32.mrb[19].mxu1 }
 0x4c6   : > { %v1464_v11 = vadd.f32 %v3822_v8, %v1460_v5  ;;  %v3824_v12 = vadd.f32 %v1429_v39, %v888_v43 }
 0x4c7   : > { %v1471_v38 = vmax.f32 %v1463_v14, 0.0  ;;  %v1465_v13 = vadd.f32 %v3823_v10, %v1456_v62  ;;  %v4942_v14 = vpop.permute.xlu0 (%p168_p0), %1682 }
 0x4c8   : > { %v1472_v15 = vmax.f32 %v1464_v11, 0.0  ;;  %v1466_v16 = vadd.f32 %v3824_v12, %v1460_v5 }
 0x4c9   : > { %v4845_v24 = vadd.f32 %v4397_v24, %v1471_v38   ;;  %v1473_v20 = vmax.f32 %v1465_v13, 0.0  ;;  %v4951_v13 = vpop.permute.xlu1 (%p168_p0), %1687 }
 0x4ca   : > { %v1480_v21 = vadd.f32 %v4393_v28, %v1472_v15   ;;  %v1474_v22 = vmax.f32 %v1466_v16, 0.0  ;;  %v1433_v57 = vpop.f32.mrb[20].mxu1 }
 0x4cb   : > { %v5258_v18 = vmov %v4845_v24  ;;  %v4849_v32 = vadd.f32 %v4389_v32, %v1473_v20   ;;  %v3825_v26 = vadd.f32 %v1433_v57, %v892_v44  ;;  %v1435_v27 = vpop.f32.mrb[21].mxu1 }
 0x4cc   : > { %v1482_v30 = vadd.f32 %v4385_v36, %v1474_v22   ;;  %v3826_v31 = vadd.f32 %v1435_v27, %v894_v45  ;;  %v1437_v34 = vpop.f32.mrb[22].mxu1 }
 0x4cd   : > { %v5259_v23 = vmov %v4849_v32  ;;  %v1467_v35 = vadd.f32 %v3825_v26, %v1456_v62  ;;  %v3827_v40 = vadd.f32 %v1437_v34, %v896_v46  ;;  %v1439_v41 = vpop.f32.mrb[23].mxu1  ;;  %v4215_v46 = vld [vmem:[%s5238_s8 + $0x40] sm:$0xff] (%p168_p0)   ;;  %v4959_v27 = vpop.permute.xlu1 (%p168_p0), %1692 }
 0x4ce   : > { %v1468_v42 = vadd.f32 %v3826_v31, %v1460_v5  ;;  %v3828_v43 = vadd.f32 %v1439_v41, %v898_v47  ;;  %v5265_v36 = vmov %v1482_v30  ;;  %v1520_v47 = vpack.c.bf16 (%p168_p0), %v1482_v30, %v1480_v21  ;;  %3603 = vmatprep.subr.bf16.mxu0 (%p168_p0), %v4215_v46 }
 0x4cf   : > { %v1475_v24 = vmax.f32 %v1467_v35, 0.0  ;;  %v1469_v48 = vadd.f32 %v3827_v40, %v1456_v62  ;;  %3604 = vmatpush3.bf16.msra.mxu0 (%p168_p0), %v4216_v53  ;;  %v4228_v36 = vld [vmem:[%s5238_s8 + $0x30] sm:$0xff] (%p168_p0)   ;;  %v1519_v56 = vpack.c.bf16 (%p168_p0), %v5259_v23, %v5258_v18  ;;  %v3450_v62 = vld [vmem:[%s5239_s9] ss:$0 sm:$0xff] (%p168_p0) }
 0x4d0   : > { %v1476_v49 = vmax.f32 %v1468_v42, 0.0  ;;  %v1470_v28 = vadd.f32 %v3828_v43, %v1460_v5  ;;  %170 = sbr.rel (!%p168_p0) target bundleno = 234 (0xea), region = 142  ;;  %1658 = vmatprep.mubr.bf16.mxu0 (%p168_p0), %v1520_v47  ;;  %3605 = vmatprep.subr.bf16.mxu0 (%p168_p0), %v4217_v54 }
 0x4d1   : > { %v4853_v25 = vadd.f32 %v4381_v25, %v1475_v24   ;;  %v1477_v51 = vmax.f32 %v1469_v48, 0.0  ;;  %v5268_v24 = vmov %v5258_v18 }
 0x4d2   : > { %v1484_v44 = vadd.f32 %v4377_v29, %v1476_v49   ;;  %v1478_v32 = vmax.f32 %v1470_v28, 0.0  ;;  %v5267_v28 = vmov %v1480_v21 }
 0x4d3   : > { %v5260_v50 = vmov %v4853_v25  ;;  %v1485_v52 = vadd.f32 %v4373_v33, %v1477_v51   ;;  %3606 = vmatpush3.bf16.msra.mxu0 (%p168_p0), %v4218_v17 }
 0x4d4   : > { %v1486_v45 = vadd.f32 %v4369_v37, %v1478_v32   ;;  %v5263_v29 = vmov %v1484_v44  ;;  %v5264_v25 = vmov %v5260_v50  ;;  %v5266_v32 = vmov %v5259_v23  ;;  %3607 = vmatprep.subr.bf16.mxu0 (%p168_p0), %v4219_v0  ;;  %v1752_v0 = vld [vmem:[%s5241_s11] sm:$0x7] (%p168_p0) }
 0x4d5   : > { %v5262_v33 = vmov %v1485_v52  ;;  %v4225_v25 = vld [vmem:[%s5238_s8 + $0x68] sm:$0xff] (%p168_p0)   ;;  %v1521_v59 = vpack.c.bf16 (%p168_p0), %v1485_v52, %v5260_v50  ;;  %3853 = vmatprep.subr.msk.bf16.mxu1 (%p168_p0), %vm1768_vm2, %v1752_v0 }
 0x4d6   : > { %v5261_v37 = vmov %v1486_v45  ;;  %v4226_v29 = vld [vmem:[%s5238_s8 + $0x28] sm:$0xff] (%p168_p0)   ;;  %v4227_v33 = vld [vmem:[%s5238_s8 + $0x70] sm:$0xff] (%p168_p0)   ;;  %v1522_v58 = vpack.c.bf16 (%p168_p0), %v1486_v45, %v1484_v44 }
 0x4d7   :  { %3608 = vmatpush3.bf16.msra.mxu0 %v4220_v3  ;;  %v4229_v37 = vld [vmem:[%s5238_s8 + $0x78] sm:$0xff]   ;;  %v1770_v3 = vsel %vm1768_vm2, %v1752_v0, 0 }
 0x4d8   :  { %3609 = vmatprep.subr.bf16.mxu0 %v4221_v19  ;;  %3694 = vmatpush3.bf16.msra.mxu1 %v1770_v3 }
 0x4db   :  { %3610 = vmatpush3.bf16.msra.mxu0 %v4222_v2 }
 0x4dc   :  { %3611 = vmatprep.subr.bf16.mxu0 %v4223_v1 }
 0x4df   :  { %3612 = vmatpush3.bf16.msra.mxu0 %v4224_v4 }
 0x4e0   :  { %3613 = vmatprep.subr.bf16.mxu0 %v4225_v25 }
 0x4e3   :  { %3614 = vmatpush3.bf16.msra.mxu0 %v4226_v29 }
 0x4e4   :  { %3615 = vmatprep.subr.bf16.mxu0 %v4227_v33 }
 0x4e7   :  { %3616 = vmatpush3.bf16.msra.mxu0 %v4228_v36 }
 0x4e8   :  { %3617 = vmatprep.subr.bf16.mxu0 %v4229_v37 }
 0x4eb   :  { %3618 = vmatpush3.bf16.msra.mxu0 %v4230_v55 }
 0x4ee   :  { %1659 = vmatmul.mubr.bf16.vlgmr.msra.gmra.mrb[0].mxu0 %v1519_v56 }
 0x4ef   :  { %1666 = vmatprep.mubr.bf16.mxu0 %v1522_v58 }
 0x4f6   :  { %1667 = vmatmul.mubr.bf16.gmra.mrb[4].mxu0 %v1521_v59 }
 0x5c1   :  { %v3619_v61 = vpop.f32.mrb[0].mxu0 }
 0x5c2   :  { %v3620_v63 = vpop.f32.mrb[1].mxu0 }
 0x5c3   :  { %v3621_v5 = vadd.f32 %v3620_v63, %v3619_v61  ;;  %v3622_v6 = vpop.f32.mrb[2].mxu0 }
 0x5c4   :  { %v3623_v7 = vpop.f32.mrb[3].mxu0 }
 0x5c5   :  { %v1661_v8 = vadd.f32 %v3621_v5, %v3450_v62  ;;  %v3624_v9 = vadd.f32 %v3623_v7, %v3622_v6  ;;  %v3467_v7 = vld [vmem:[%s5242_s12] ss:$0 sm:$0xff] }
 0x5c7   :  { %v1695_v10 = vmul.f32 %v4937_v60, %v1661_v8  ;;  %v1664_v39 = vadd.f32 %v3624_v9, %v3450_v62 }
 0x5c9   :  { %1700 = vst.msk [vmem:[%s5248_s18] sm:$0xff] %vm1699_vm1, %v1695_v10  ;;  %v1696_v11 = vmul.f32 %v4942_v14, %v1664_v39  ;;  %v3625_v12 = vpop.f32.mrb[4].mxu0  ;;  %v1704_v38 = vsel %vm1699_vm1, %v1695_v10, -inf }
 0x5ca   :  { %v3626_v15 = vpop.f32.mrb[5].mxu0  ;;  %1705 = vmax.xlane.f32.xlu0 %v1704_v38 }
 0x5cb   :  { %1701 = vst.msk [vmem:[%s5248_s18 + $0x8] sm:$0xff] %vm1699_vm1, %v1696_v11  ;;  %v3627_v16 = vadd.f32 %v3626_v15, %v3625_v12  ;;  %v3628_v18 = vpop.f32.mrb[6].mxu0  ;;  %v1707_v20 = vsel %vm1699_vm1, %v1696_v11, -inf }
 0x5cc   :  { %v3629_v21 = vpop.f32.mrb[7].mxu0  ;;  %1708 = vmax.xlane.f32.xlu1 %v1707_v20 }
 0x5cd   :  { %v1669_v22 = vadd.f32 %v3627_v16, %v3450_v62  ;;  %v3630_v57 = vadd.f32 %v3629_v21, %v3628_v18 }
 0x5cf   :  { %v1697_v23 = vmul.f32 %v4951_v13, %v1669_v22  ;;  %v1672_v26 = vadd.f32 %v3630_v57, %v3450_v62 }
 0x5d1   :  { %1702 = vst.msk [vmem:[%s5248_s18 + $0x10] sm:$0xff] %vm1699_vm1, %v1697_v23  ;;  %v1698_v30 = vmul.f32 %v4959_v27, %v1672_v26  ;;  %v1710_v31 = vsel %vm1699_vm1, %v1697_v23, -inf }
 0x5d2   :  { %1711 = vmax.xlane.f32.xlu0 %v1710_v31 }
 0x5d3   :  { %1703 = vst.msk [vmem:[%s5248_s18 + $0x18] sm:$0xff] %vm1699_vm1, %v1698_v30  ;;  %v1713_v34 = vsel %vm1699_vm1, %v1698_v30, -inf }
 0x5d6   :  { %1714 = vmax.xlane.f32.xlu0 %v1713_v34 }
 0x657   :  { %v1706_v35 = vpop.xlane.xlu0 %1705 }
 0x658   :  { %v1716_v40 = vsub.f32 %v1695_v10, %v1706_v35 }
 0x659   :  { %v1709_v41 = vpop.xlane.xlu1 %1708 }
 0x65a   :  { %v1720_v42 = vmul.f32 1.442695, %v1716_v40  ;;  %v1717_v43 = vsub.f32 %v1696_v11, %v1709_v41 }
 0x65c   :  { %4231 = vpow2.f32 %v1720_v42  ;;  %v1722_v24 = vmul.f32 1.442695, %v1717_v43 }
 0x65e   :  { %4233 = vpow2.f32 %v1722_v24 }
 0x65f   :  { %v1712_v48 = vpop.xlane.xlu0 %1711 }
 0x660   :  { %v1718_v49 = vsub.f32 %v1697_v23, %v1712_v48 }
 0x662   :  { %v1724_v28 = vmul.f32 1.442695, %v1718_v49 }
 0x663   :  { %v1715_v50 = vpop.xlane.xlu0 %1714 }
 0x664   :  { %4235 = vpow2.f32 %v1724_v28  ;;  %v1719_v51 = vsub.f32 %v1698_v30, %v1715_v50 }
 0x666   :  { %v4232_v44 = vpop.eup %4231  ;;  %v1726_v32 = vmul.f32 1.442695, %v1719_v51 }
 0x667   :  { %v1728_v52 = vsel %vm1699_vm1, %v4232_v44, 0.0 }
 0x668   :  { %v4234_v45 = vpop.eup %4233  ;;  %4237 = vpow2.f32 %v1726_v32  ;;  %1729 = vadd.xlane.f32.xlu1 %v1728_v52 }
 0x669   :  { %v1731_v46 = vsel %vm1699_vm1, %v4234_v45, 0.0 }
 0x66a   :  { %1732 = vadd.xlane.f32.xlu0 %v1731_v46 }
 0x66e   :  { %v4236_v47 = vpop.eup %4235 }
 0x66f   :  { %v1734_v53 = vsel %vm1699_vm1, %v4236_v47, 0.0 }
 0x670   :  { %1735 = vadd.xlane.f32.xlu1 %v1734_v53 }
 0x672   :  { %v4238_v54 = vpop.eup %4237 }
 0x673   :  { %v1737_v17 = vsel %vm1699_vm1, %v4238_v54, 0.0 }
 0x674   :  { %1738 = vadd.xlane.f32.xlu0 %v1737_v17 }
 0x6f5   :  { %v1730_v19 = vpop.xlane.xlu1 %1729 }
 0x6f6   :  { %4239 = vrcp.f32 %v1730_v19 }
 0x6f7   :  { %v1733_v2 = vpop.xlane.xlu0 %1732 }
 0x6f8   :  { %4241 = vrcp.f32 %v1733_v2 }
 0x6fd   :  { %v1736_v1 = vpop.xlane.xlu1 %1735 }
 0x6fe   :  { %4243 = vrcp.f32 %v1736_v1 }
 0x700   :  { %v4240_v4 = vpop.eup %4239 }
 0x701   :  { %v1739_v25 = vpop.xlane.xlu0 %1738  ;;  %v1744_v29 = vmul.f32 %v4240_v4, %v4232_v44 }
 0x702   :  { %v4242_v33 = vpop.eup %4241  ;;  %4245 = vrcp.f32 %v1739_v25 }
 0x703   :  { %v1745_v36 = vmul.f32 %v4242_v33, %v4234_v45  ;;  %v1748_v37 = vmul.f32 %v1744_v29, %v4937_v60 }
 0x705   :  { %v1749_v55 = vmul.f32 %v1745_v36, %v4942_v14 }
 0x707   :  { %v1753_v56 = vpack.c.bf16 %v1749_v55, %v1748_v37 }
 0x708   :  { %v4244_v58 = vpop.eup %4243 }
 0x709   :  { %3695 = vmatprep.mubr.msk.bf16.mxu1 %vm1699_vm1, %v1753_v56  ;;  %v1746_v59 = vmul.f32 %v4244_v58, %v4236_v47 }
 0x70b   :  { %v1750_v63 = vmul.f32 %v1746_v59, %v4951_v13 }
 0x70c   :  { %v4246_v61 = vpop.eup %4245 }
 0x70d   :  { %v1747_v62 = vmul.f32 %v4246_v61, %v4238_v54 }
 0x70f   :  { %v1751_v5 = vmul.f32 %v1747_v62, %v4959_v27 }
 0x711   :  { %v1754_v6 = vpack.c.bf16 %v1751_v5, %v1750_v63 }
 0x713   :  { %3696 = vmatmul.mubr.msk.bf16.vlgmr.msra.gmra.mrb[0].mxu1 %vm1699_vm1, %v1754_v6 }
 0x7e6   :  { %v3697_v8 = vpop.f32.mrb[0].mxu1 }
 0x7e7   :  { %v1815_v9 = vadd.f32 %v3697_v8, %v3467_v7   ;;  %v1806_v10 = vpop.f32.mrb[1].mxu1 }
 0x7e8   :  { %v1807_v39 = vadd.f32 %v3467_v7, %v1806_v10   ;;  %v3698_v11 = vpop.f32.mrb[2].mxu1 }
 0x7e9   :  { %v1818_v12 = vadd.f32 %v3698_v11, %v3467_v7   ;;  %v1809_v38 = vpop.f32.mrb[3].mxu1 }
 0x7ea   :  { %v1810_v15 = vadd.f32 %v3467_v7, %v1809_v38  }
 0x7eb LB: > { %v1838_v16 = vpack.c.bf16 %v4413_v15, %v4417_v39  ;;  %v1839_v18 = vpack.c.bf16 %v4405_v12, %v4409_v9  ;;  %s3600_s10 = smul.u32 48, %s4421_s28  ;;  %s2278_s3 = scalar_lea.vmem %s5245_s15, %s4421_s28  ;;  %s4421_s28 = sphi %s4998_s28, %s1826_s28   ;;  %v4417_v39 = vphi %v1807_v39, %v5272_v39   ;;  %v4413_v15 = vphi %v1810_v15, %v5271_v15   ;;  %v4409_v9 = vphi %v1815_v9, %v5270_v9   ;;  %v4405_v12 = vphi %v1818_v12, %v5269_v12  }
 0x7ec   : > { %v3516_v3 = vld [vmem:[%s2278_s3] ss:$0 sm:$0xff]  ;;  %s1826_s28 = sadd.s32 1, %s4421_s28  }
 0x7ed   : > { %3699 = vmatprep.subr.bf16.mxu1 %v1838_v16  ;;  %s1833_s5 = scalar_lea.vmem %s5243_s13, %s3600_s10  ;;  %s5032_s0 = scalar_lea.vmem %s5244_s14, %s3600_s10 }
 0x7ee   : > { %3700 = vmatpush3.bf16.msra.mxu1 %v1838_v16  ;;  %v4247_v20 = vld [vmem:[%s1833_s5] sm:$0xff]   ;;  %v4248_v21 = vld [vmem:[%s1833_s5 + $0x8] sm:$0xff]   ;;  %v4249_v22 = vld [vmem:[%s1833_s5 + $0x10] sm:$0xff]   ;;  %p1823_p1 = scmp.ge.s32.totalorder %s1826_s28, 3  }
 0x7ef   : > { %3701 = vmatprep.subr.bf16.mxu1 %v1839_v18  ;;  %3703 = vmatprep.mubr.msk.bf16.mxu1 %vm106_vm0, %v4247_v20  ;;  %v4250_v57 = vld [vmem:[%s1833_s5 + $0x18] sm:$0xff]   ;;  %v4251_v23 = vld [vmem:[%s1833_s5 + $0x20] sm:$0xff]   ;;  %v4252_v26 = vld [vmem:[%s1833_s5 + $0x28] sm:$0xff]   ;;  %s5130_s6 = smov (%p1823_p1), 0  }
 0x7f0   : > { %v4253_v30 = vld [vmem:[%s5032_s0 + $0x10] sm:$0xff]   ;;  %v4254_v31 = vld [vmem:[%s5032_s0 + $0x18] sm:$0xff]   ;;  %v4255_v34 = vld [vmem:[%s5032_s0] sm:$0xff]  }
 0x7f1   : > { %3715 = vmatprep.subr.bf16.mxu0 %v4253_v30  ;;  %v4256_v32 = vld [vmem:[%s5032_s0 + $0x8] sm:$0xff]   ;;  %v4257_v45 = vld [vmem:[%s5032_s0 + $0x20] sm:$0xff]  }
 0x7f2   : > { %3702 = vmatpush3.bf16.msra.mxu1 %v1839_v18  ;;  %3716 = vmatpush3.bf16.msra.mxu0 %v4253_v30  ;;  %v4258_v0 = vld [vmem:[%s5032_s0 + $0x28] sm:$0xff]   ;;  %v4259_v10 = vld [vmem:[%s5246_s16] sm:$0xff] (%p1823_p1)  }
 0x7f3   : > { %3707 = vmatprep.subr.bf16.mxu1 %v1838_v16  ;;  %3717 = vmatprep.subr.bf16.mxu0 %v4254_v31  ;;  %v4260_v11 = vld [vmem:[%s5246_s16 + $0x8] sm:$0xff] (%p1823_p1)  }
 0x7f5   : > { %3704 = vmatmul.mubr.msk.bf16.vlgmr.msra.gmra.mrb[0].mxu1 %vm106_vm0, %v4248_v21 }
 0x7f6   : > { %3708 = vmatpush3.bf16.msra.mxu1 %v1838_v16  ;;  %3711 = vmatprep.mubr.msk.bf16.mxu1 %vm106_vm0, %v4249_v22 }
 0x7f7   : > { %3709 = vmatprep.subr.bf16.mxu1 %v1839_v18  ;;  %3718 = vmatpush3.bf16.msra.mxu0 %v4254_v31 }
 0x7f8   : > { %3723 = vmatprep.subr.bf16.mxu0 %v4255_v34 }
 0x7fa   : > { %3710 = vmatpush3.bf16.msra.mxu1 %v1839_v18 }
 0x7fb   : > { %3731 = vmatprep.subr.bf16.mxu1 %v1838_v16 }
 0x7fd   : > { %3712 = vmatmul.mubr.msk.bf16.vlgmr.msra.gmra.mrb[4].mxu1 %vm106_vm0, %v4250_v57 }
 0x7fe   : > { %3732 = vmatpush3.bf16.msra.mxu1 %v1838_v16  ;;  %3735 = vmatprep.mubr.msk.bf16.mxu1 %vm106_vm0, %v4251_v23 }
 0x7ff   : > { %3733 = vmatprep.subr.bf16.mxu1 %v1839_v18 }
 0x802   : > { %3734 = vmatpush3.bf16.msra.mxu1 %v1839_v18 }
 0x805   : > { %3736 = vmatmul.mubr.msk.bf16.vlgmr.msra.gmra.mrb[8].mxu1 %vm106_vm0, %v4252_v26 }
 0x8c8   : > { %v3705_v35 = vpop.f32.mrb[0].mxu1 }
 0x8c9   : > { %v1890_v40 = vpop.f32.mrb[1].mxu1 }
 0x8ca   : > { %v3706_v41 = vpop.f32.mrb[2].mxu1 }
 0x8cb   : > { %v1912_v42 = vpack.c.bf16 %v3706_v41, %v3705_v35  ;;  %v1893_v43 = vpop.f32.mrb[3].mxu1 }
 0x8cc   : > { %v1911_v24 = vpack.c.bf16 %v1893_v43, %v1890_v40 }
 0x8d0   : > { %v3713_v48 = vpop.f32.mrb[4].mxu1 }
 0x8d1   : > { %v1970_v49 = vpop.f32.mrb[5].mxu1 }
 0x8d2   : > { %v3714_v28 = vpop.f32.mrb[6].mxu1 }
 0x8d3   : > { %v1992_v50 = vpack.c.bf16 %v3714_v28, %v3713_v48  ;;  %v1973_v51 = vpop.f32.mrb[7].mxu1 }
 0x8d4   : > { %v1991_v44 = vpack.c.bf16 %v1973_v51, %v1970_v49 }
 0x8d6   : > { %3719 = vmatprep.mubr.msk.bf16.mxu0 %vm106_vm0, %v1991_v44 }
 0x8d7   : > { %3720 = vmatmul.mubr.msk.bf16.vlgmr.msra.gmra.mrb[0].mxu0 %vm106_vm0, %v1992_v50 }
 0x8d8   : > { %3724 = vmatpush3.bf16.msra.mxu0 %v4255_v34  ;;  %3727 = vmatprep.mubr.msk.bf16.mxu0 %vm106_vm0, %v1911_v24  ;;  %v3737_v52 = vpop.f32.mrb[8].mxu1 }
 0x8d9   : > { %3725 = vmatprep.subr.bf16.mxu0 %v4256_v32  ;;  %v2184_v46 = vpop.f32.mrb[9].mxu1 }
 0x8da   : > { %v3738_v47 = vpop.f32.mrb[10].mxu1 }
 0x8db   : > { %v2206_v53 = vpack.c.bf16 %v3738_v47, %v3737_v52  ;;  %v2187_v54 = vpop.f32.mrb[11].mxu1 }
 0x8dc   : > { %3726 = vmatpush3.bf16.msra.mxu0 %v4256_v32  ;;  %v2205_v17 = vpack.c.bf16 %v2187_v54, %v2184_v46 }
 0x8dd   : > { %3739 = vmatprep.subr.bf16.mxu0 %v4257_v45 }
 0x8e3   : > { %3728 = vmatmul.mubr.msk.bf16.vlgmr.msra.gmra.mrb[0].mxu0 %vm106_vm0, %v1912_v42 }
 0x8e4   : > { %3740 = vmatpush3.bf16.msra.mxu0 %v4257_v45  ;;  %3743 = vmatprep.mubr.msk.bf16.mxu0 %vm106_vm0, %v2205_v17 }
 0x8e5   : > { %3741 = vmatprep.subr.bf16.mxu0 %v4258_v0 }
 0x8e8   : > { %3742 = vmatpush3.bf16.msra.mxu0 %v4258_v0 }
 0x8e9   :  { %3747 = vmatprep.subr.bf16.mxu0 (%p1823_p1), %v4259_v10 }
 0x8ef   : > { %3744 = vmatmul.mubr.msk.bf16.vlgmr.msra.gmra.mrb[0].mxu0 %vm106_vm0, %v2206_v53 }
 0x8f0   :  { %3748 = vmatpush3.bf16.msra.mxu0 (%p1823_p1), %v4259_v10 }
 0x8f1   :  { %3749 = vmatprep.subr.bf16.mxu0 (%p1823_p1), %v4260_v11 }
 0x8f4   :  { %3750 = vmatpush3.bf16.msra.mxu0 (%p1823_p1), %v4260_v11 }
 0x9c2   : > { %v3745_v19 = vpop.f32.mrb[0].mxu0 }
 0x9c3   : > { %v2288_v2 = vadd.f32 %v3745_v19, %v3516_v3  ;;  %v2259_v1 = vpop.f32.mrb[1].mxu0 }
 0x9c4   : > { %v2286_v4 = vadd.f32 %v3516_v3, %v2259_v1  ;;  %v3746_v25 = vpop.f32.mrb[2].mxu0 }
 0x9c5   : > { %v2292_v29 = vmax.f32 %v2288_v2, 0.0  ;;  %v2289_v33 = vadd.f32 %v3746_v25, %v3516_v3  ;;  %v2262_v36 = vpop.f32.mrb[3].mxu0  ;;  %v3526_v2 = vld [vmem:[%s5241_s11 + $0x4] sm:$0x7] (%p1823_p1) }
 0x9c6   : > { %v2290_v37 = vmax.f32 %v2286_v4, 0.0  ;;  %v2287_v55 = vadd.f32 %v3516_v3, %v2262_v36  ;;  %3854 = vmatprep.subr.msk.bf16.mxu1 (%p1823_p1), %vm1768_vm2, %v3526_v2  ;;  %v2458_v1 = vsel (%p1823_p1), %vm1768_vm2, %v3526_v2, 0 }
 0x9c7   : > { %v2296_v56 = vadd.f32 %v4409_v9, %v2292_v29  ;;  %v2293_v58 = vmax.f32 %v2289_v33, 0.0  ;;  %3756 = vmatpush3.bf16.msra.mxu1 (%p1823_p1), %v2458_v1 }
 0x9c8   : > { %v2294_v59 = vadd.f32 %v4417_v39, %v2290_v37  ;;  %v2291_v61 = vmax.f32 %v2287_v55, 0.0  ;;  %1825 = sbr.rel (!%p1823_p1) target bundleno = 2027 (0x7eb), region = 153 }
 0x9c9   : > { %v2300_v62 = vmul.f32 %v2296_v56, %v4951_v13   ;;  %v2297_v63 = vadd.f32 %v4405_v12, %v2293_v58 }
 0x9ca   : > { %v2298_v5 = vmul.f32 %v2294_v59, %v4937_v60   ;;  %v2295_v6 = vadd.f32 %v4413_v15, %v2291_v61 }
 0x9cb   : > { %v2301_v7 = vmul.f32 %v2297_v63, %v4959_v27   ;;  %v5270_v9 = vmov %v2300_v62 }
 0x9cc   : > { %v2299_v8 = vmul.f32 %v2295_v6, %v4942_v14   ;;  %v5272_v39 = vmov %v2298_v5  ;;  %v3517_v9 = vld [vmem:[%s5247_s17] ss:$0 sm:$0xff] (%p1823_p1) }
 0x9cd   : > { %v5269_v12 = vmov %v2301_v7  ;;  %v2307_v38 = vpack.c.bf16 (%p1823_p1), %v2301_v7, %v2300_v62 }
 0x9ce   : > { %v5271_v15 = vmov %v2299_v8  ;;  %v2306_v39 = vpack.c.bf16 (%p1823_p1), %v2299_v8, %v2298_v5 }
 0x9d0   :  { %3751 = vmatprep.mubr.msk.bf16.mxu0 %vm106_vm0, %v2306_v39  ;;  %v3528_v39 = vld [vmem:[%s5242_s12 + $0x1] ss:$0 sm:$0xff] }
 0x9d1   :  { %3752 = vmatmul.mubr.msk.bf16.vlgmr.msra.gmra.mrb[0].mxu0 %vm106_vm0, %v2307_v38 }
 0xaa4   :  { %v3753_v12 = vpop.f32.mrb[0].mxu0 }
 0xaa5   :  { %v2376_v15 = vadd.f32 %v3753_v12, %v3517_v9  ;;  %v2367_v16 = vpop.f32.mrb[1].mxu0 }
 0xaa6   :  { %v2368_v18 = vadd.f32 %v3517_v9, %v2367_v16  ;;  %v3754_v20 = vpop.f32.mrb[2].mxu0 }
 0xaa7   :  { %v2384_v21 = vmul.f32 %v2376_v15, %v4951_v13  ;;  %v2379_v22 = vadd.f32 %v3754_v20, %v3517_v9  ;;  %v2370_v57 = vpop.f32.mrb[3].mxu0 }
 0xaa8   :  { %v2382_v23 = vmul.f32 %v2368_v18, %v4937_v60  ;;  %v2371_v26 = vadd.f32 %v3517_v9, %v2370_v57 }
 0xaa9   :  { %3524 = vst.msk [vmem:[%s5248_s18 + $0x30] sm:$0xff] %vm1699_vm1, %v2384_v21  ;;  %v2385_v30 = vmul.f32 %v2379_v22, %v4959_v27  ;;  %v2397_v31 = vsel %vm1699_vm1, %v2384_v21, -inf }
 0xaaa   :  { %3522 = vst.msk [vmem:[%s5248_s18 + $0x20] sm:$0xff] %vm1699_vm1, %v2382_v23  ;;  %v2383_v34 = vmul.f32 %v2371_v26, %v4942_v14  ;;  %2398 = vmax.xlane.f32.xlu1 %v2397_v31  ;;  %v2391_v35 = vsel %vm1699_vm1, %v2382_v23, -inf }
 0xaab   :  { %3525 = vst.msk [vmem:[%s5248_s18 + $0x38] sm:$0xff] %vm1699_vm1, %v2385_v30  ;;  %2392 = vmax.xlane.f32.xlu0 %v2391_v35  ;;  %v2400_v40 = vsel %vm1699_vm1, %v2385_v30, -inf }
 0xaac   :  { %3523 = vst.msk [vmem:[%s5248_s18 + $0x28] sm:$0xff] %vm1699_vm1, %v2383_v34  ;;  %v2394_v41 = vsel %vm1699_vm1, %v2383_v34, -inf }
 0xaae   :  { %2401 = vmax.xlane.f32.xlu1 %v2400_v40 }
 0xaaf   :  { %2395 = vmax.xlane.f32.xlu0 %v2394_v41 }
 0xb37   :  { %v2399_v42 = vpop.xlane.xlu1 %2398 }
 0xb38   :  { %v2405_v43 = vsub.f32 %v2384_v21, %v2399_v42  ;;  %v2393_v24 = vpop.xlane.xlu0 %2392 }
 0xb39   :  { %v2403_v48 = vsub.f32 %v2382_v23, %v2393_v24 }
 0xb3a   :  { %v2411_v49 = vmul.f32 1.442695, %v2405_v43 }
 0xb3b   :  { %v2407_v28 = vmul.f32 1.442695, %v2403_v48  ;;  %v2402_v50 = vpop.xlane.xlu1 %2401 }
 0xb3c   :  { %v2406_v51 = vsub.f32 %v2385_v30, %v2402_v50  ;;  %v2396_v44 = vpop.xlane.xlu0 %2395 }
 0xb3d   :  { %4261 = vpow2.f32 %v2407_v28  ;;  %v2404_v32 = vsub.f32 %v2383_v34, %v2396_v44 }
 0xb3e   :  { %4263 = vpow2.f32 %v2411_v49  ;;  %v2413_v52 = vmul.f32 1.442695, %v2406_v51 }
 0xb3f   :  { %v2409_v45 = vmul.f32 1.442695, %v2404_v32 }
 0xb41   :  { %4265 = vpow2.f32 %v2409_v45 }
 0xb42   :  { %4267 = vpow2.f32 %v2413_v52 }
 0xb47   :  { %v4262_v46 = vpop.eup %4261 }
 0xb48   :  { %v2415_v47 = vsel %vm1699_vm1, %v4262_v46, 0.0  ;;  %v4264_v53 = vpop.eup %4263 }
 0xb49   :  { %2416 = vadd.xlane.f32.xlu0 %v2415_v47  ;;  %v2421_v17 = vsel %vm1699_vm1, %v4264_v53, 0.0 }
 0xb4b   :  { %v4266_v54 = vpop.eup %4265 }
 0xb4c   :  { %v2418_v0 = vsel %vm1699_vm1, %v4266_v54, 0.0  ;;  %v4268_v3 = vpop.eup %4267 }
 0xb4d   :  { %2422 = vadd.xlane.f32.xlu0 %v2421_v17  ;;  %2419 = vadd.xlane.f32.xlu1 %v2418_v0  ;;  %v2424_v19 = vsel %vm1699_vm1, %v4268_v3, 0.0 }
 0xb51   :  { %2425 = vadd.xlane.f32.xlu1 %v2424_v19 }
 0xbd6   :  { %v2417_v4 = vpop.xlane.xlu0 %2416 }
 0xbd7   :  { %4269 = vrcp.f32 %v2417_v4 }
 0xbda   :  { %v2420_v25 = vpop.xlane.xlu1 %2419  ;;  %v2423_v29 = vpop.xlane.xlu0 %2422 }
 0xbdb   :  { %4271 = vrcp.f32 %v2420_v25 }
 0xbdc   :  { %4273 = vrcp.f32 %v2423_v29 }
 0xbde   :  { %v2426_v33 = vpop.xlane.xlu1 %2425 }
 0xbdf   :  { %4275 = vrcp.f32 %v2426_v33 }
 0xbe1   :  { %v4270_v36 = vpop.eup %4269 }
 0xbe2   :  { %v2431_v37 = vmul.f32 %v4270_v36, %v4262_v46 }
 0xbe4   :  { %v2435_v59 = vmul.f32 %v2431_v37, %v4937_v60 }
 0xbe5   :  { %v4272_v55 = vpop.eup %4271 }
 0xbe6   :  { %v4274_v56 = vpop.eup %4273  ;;  %v2432_v58 = vmul.f32 %v4272_v55, %v4266_v54 }
 0xbe7   :  { %v2433_v62 = vmul.f32 %v4274_v56, %v4264_v53 }
 0xbe8   :  { %v2436_v61 = vmul.f32 %v2432_v58, %v4942_v14 }
 0xbe9   :  { %v4276_v63 = vpop.eup %4275  ;;  %v2437_v7 = vmul.f32 %v2433_v62, %v4951_v13 }
 0xbea   :  { %v2441_v5 = vpack.c.bf16 %v2436_v61, %v2435_v59  ;;  %v2434_v6 = vmul.f32 %v4276_v63, %v4268_v3 }
 0xbec   :  { %3757 = vmatprep.mubr.msk.bf16.mxu1 %vm1699_vm1, %v2441_v5  ;;  %v2438_v8 = vmul.f32 %v2434_v6, %v4959_v27 }
 0xbee   :  { %v2442_v10 = vpack.c.bf16 %v2438_v8, %v2437_v7 }
 0xbf0   :  { %3758 = vmatmul.mubr.msk.bf16.vlgmr.msra.gmra.mrb[0].mxu1 %vm1699_vm1, %v2442_v10 }
 0xcc3   :  { %v3759_v11 = vpop.f32.mrb[0].mxu1 }
 0xcc4   :  { %v2503_v38 = vadd.f32 %v3759_v11, %v3528_v39   ;;  %v2494_v9 = vpop.f32.mrb[1].mxu1 }
 0xcc5   :  { %v2495_v12 = vadd.f32 %v3528_v39, %v2494_v9   ;;  %v3760_v15 = vpop.f32.mrb[2].mxu1 }
 0xcc6   :  { %v2506_v16 = vadd.f32 %v3760_v15, %v3528_v39   ;;  %v2497_v18 = vpop.f32.mrb[3].mxu1 }
 0xcc7   :  { %v2498_v20 = vadd.f32 %v3528_v39, %v2497_v18  }
 0xcc8 LB: > { %v2526_v21 = vpack.c.bf16 %v4433_v20, %v4437_v12  ;;  %v2527_v22 = vpack.c.bf16 %v4425_v16, %v4429_v38  ;;  %s3602_s12 = smul.u32 48, %s4441_s6  ;;  %s3158_s21 = scalar_lea.vmem %s5245_s15, %s4441_s6  ;;  %s4441_s6 = sphi %s5130_s6, %s2514_s6   ;;  %v4437_v12 = vphi %v2495_v12, %v5276_v12   ;;  %v4433_v20 = vphi %v2498_v20, %v5275_v20   ;;  %v4429_v38 = vphi %v2503_v38, %v5274_v38   ;;  %v4425_v16 = vphi %v2506_v16, %v5273_v16  }
 0xcc9   : > { %v3582_v1 = vld [vmem:[%s3158_s21 + $0x3] ss:$0 sm:$0xff]  ;;  %s2514_s6 = sadd.s32 1, %s4441_s6  }
 0xcca   : > { %3761 = vmatprep.subr.bf16.mxu1 %v2526_v21  ;;  %s2521_s1 = scalar_lea.vmem %s5243_s13, %s3602_s12  ;;  %s5164_s8 = scalar_lea.vmem %s5244_s14, %s3602_s12 }
 0xccb   : > { %3762 = vmatpush3.bf16.msra.mxu1 %v2526_v21  ;;  %v4277_v57 = vld [vmem:[%s2521_s1] sm:$0xff]   ;;  %v4278_v23 = vld [vmem:[%s2521_s1 + $0x8] sm:$0xff]   ;;  %v4279_v26 = vld [vmem:[%s2521_s1 + $0x10] sm:$0xff]   ;;  %p2511_p2 = scmp.ge.s32.totalorder %s2514_s6, 3  }
 0xccc   : > { %3763 = vmatprep.subr.bf16.mxu1 %v2527_v22  ;;  %3765 = vmatprep.mubr.msk.bf16.mxu1 %vm106_vm0, %v4277_v57  ;;  %v4280_v30 = vld [vmem:[%s2521_s1 + $0x18] sm:$0xff]   ;;  %v4281_v31 = vld [vmem:[%s2521_s1 + $0x20] sm:$0xff]   ;;  %v4282_v34 = vld [vmem:[%s2521_s1 + $0x28] sm:$0xff]  }
 0xccd   : > { %v4283_v35 = vld [vmem:[%s5164_s8 + $0xa0] sm:$0xff]   ;;  %v4284_v40 = vld [vmem:[%s5164_s8 + $0xa8] sm:$0xff]   ;;  %v4285_v41 = vld [vmem:[%s5164_s8 + $0x90] sm:$0xff]  }
 0xcce   : > { %3777 = vmatprep.subr.bf16.mxu0 %v4283_v35  ;;  %v4286_v46 = vld [vmem:[%s5164_s8 + $0x98] sm:$0xff]   ;;  %v4287_v53 = vld [vmem:[%s5164_s8 + $0xb0] sm:$0xff]  }
 0xccf   : > { %3764 = vmatpush3.bf16.msra.mxu1 %v2527_v22  ;;  %3778 = vmatpush3.bf16.msra.mxu0 %v4283_v35  ;;  %v4288_v2 = vld [vmem:[%s5164_s8 + $0xb8] sm:$0xff]   ;;  %v4289_v9 = vld [vmem:[%s5246_s16 + $0x10] sm:$0xff] (%p2511_p2)  }
 0xcd0   : > { %3769 = vmatprep.subr.bf16.mxu1 %v2526_v21  ;;  %3779 = vmatprep.subr.bf16.mxu0 %v4284_v40  ;;  %v4290_v15 = vld [vmem:[%s5246_s16 + $0x18] sm:$0xff] (%p2511_p2)  }
 0xcd2   : > { %3766 = vmatmul.mubr.msk.bf16.vlgmr.msra.gmra.mrb[0].mxu1 %vm106_vm0, %v4278_v23 }
 0xcd3   : > { %3770 = vmatpush3.bf16.msra.mxu1 %v2526_v21  ;;  %3773 = vmatprep.mubr.msk.bf16.mxu1 %vm106_vm0, %v4279_v26 }
 0xcd4   : > { %3771 = vmatprep.subr.bf16.mxu1 %v2527_v22  ;;  %3780 = vmatpush3.bf16.msra.mxu0 %v4284_v40 }
 0xcd5   : > { %3785 = vmatprep.subr.bf16.mxu0 %v4285_v41 }
 0xcd7   : > { %3772 = vmatpush3.bf16.msra.mxu1 %v2527_v22 }
 0xcd8   : > { %3793 = vmatprep.subr.bf16.mxu1 %v2526_v21 }
 0xcda   : > { %3774 = vmatmul.mubr.msk.bf16.vlgmr.msra.gmra.mrb[4].mxu1 %vm106_vm0, %v4280_v30 }
 0xcdb   : > { %3794 = vmatpush3.bf16.msra.mxu1 %v2526_v21  ;;  %3797 = vmatprep.mubr.msk.bf16.mxu1 %vm106_vm0, %v4281_v31 }
 0xcdc   : > { %3795 = vmatprep.subr.bf16.mxu1 %v2527_v22 }
 0xcdf   : > { %3796 = vmatpush3.bf16.msra.mxu1 %v2527_v22 }
 0xce2   : > { %3798 = vmatmul.mubr.msk.bf16.vlgmr.msra.gmra.mrb[8].mxu1 %vm106_vm0, %v4282_v34 }
 0xda5   : > { %v3767_v42 = vpop.f32.mrb[0].mxu1 }
 0xda6   : > { %v2578_v43 = vpop.f32.mrb[1].mxu1 }
 0xda7   : > { %v3768_v24 = vpop.f32.mrb[2].mxu1 }
 0xda8   : > { %v2601_v48 = vpack.c.bf16 %v3768_v24, %v3767_v42  ;;  %v2581_v49 = vpop.f32.mrb[3].mxu1 }
 0xda9   : > { %v2600_v28 = vpack.c.bf16 %v2581_v49, %v2578_v43 }
 0xdad   : > { %v3775_v50 = vpop.f32.mrb[4].mxu1 }
 0xdae   : > { %v2659_v51 = vpop.f32.mrb[5].mxu1 }
 0xdaf   : > { %v3776_v44 = vpop.f32.mrb[6].mxu1 }
 0xdb0   : > { %v2682_v32 = vpack.c.bf16 %v3776_v44, %v3775_v50  ;;  %v2662_v52 = vpop.f32.mrb[7].mxu1 }
 0xdb1   : > { %v2681_v45 = vpack.c.bf16 %v2662_v52, %v2659_v51 }
 0xdb3   : > { %3781 = vmatprep.mubr.msk.bf16.mxu0 %vm106_vm0, %v2681_v45 }
 0xdb4   : > { %3782 = vmatmul.mubr.msk.bf16.vlgmr.msra.gmra.mrb[0].mxu0 %vm106_vm0, %v2682_v32 }
 0xdb5   : > { %3786 = vmatpush3.bf16.msra.mxu0 %v4285_v41  ;;  %3789 = vmatprep.mubr.msk.bf16.mxu0 %vm106_vm0, %v2600_v28  ;;  %v3799_v47 = vpop.f32.mrb[8].mxu1 }
 0xdb6   : > { %3787 = vmatprep.subr.bf16.mxu0 %v4286_v46  ;;  %v2874_v54 = vpop.f32.mrb[9].mxu1 }
 0xdb7   : > { %v3800_v17 = vpop.f32.mrb[10].mxu1 }
 0xdb8   : > { %v2897_v0 = vpack.c.bf16 %v3800_v17, %v3799_v47  ;;  %v2877_v3 = vpop.f32.mrb[11].mxu1 }
 0xdb9   : > { %3788 = vmatpush3.bf16.msra.mxu0 %v4286_v46  ;;  %v2896_v19 = vpack.c.bf16 %v2877_v3, %v2874_v54 }
 0xdba   : > { %3801 = vmatprep.subr.bf16.mxu0 %v4287_v53 }
 0xdc0   : > { %3790 = vmatmul.mubr.msk.bf16.vlgmr.msra.gmra.mrb[0].mxu0 %vm106_vm0, %v2601_v48 }
 0xdc1   : > { %3802 = vmatpush3.bf16.msra.mxu0 %v4287_v53  ;;  %3805 = vmatprep.mubr.msk.bf16.mxu0 %vm106_vm0, %v2896_v19 }
 0xdc2   : > { %3803 = vmatprep.subr.bf16.mxu0 %v4288_v2 }
 0xdc5   : > { %3804 = vmatpush3.bf16.msra.mxu0 %v4288_v2 }
 0xdc6   :  { %3809 = vmatprep.subr.bf16.mxu0 (%p2511_p2), %v4289_v9 }
 0xdcc   : > { %3806 = vmatmul.mubr.msk.bf16.vlgmr.msra.gmra.mrb[0].mxu0 %vm106_vm0, %v2897_v0 }
 0xdcd   :  { %3810 = vmatpush3.bf16.msra.mxu0 (%p2511_p2), %v4289_v9 }
 0xdce   :  { %3811 = vmatprep.subr.bf16.mxu0 (%p2511_p2), %v4290_v15 }
 0xdd1   :  { %3812 = vmatpush3.bf16.msra.mxu0 (%p2511_p2), %v4290_v15 }
 0xe9f   : > { %v3807_v4 = vpop.f32.mrb[0].mxu0 }
 0xea0   : > { %v2980_v25 = vadd.f32 %v3807_v4, %v3582_v1  ;;  %v2950_v29 = vpop.f32.mrb[1].mxu0 }
 0xea1   : > { %v2978_v33 = vadd.f32 %v3582_v1, %v2950_v29  ;;  %v3808_v36 = vpop.f32.mrb[2].mxu0 }
 0xea2   : > { %v2984_v37 = vmax.f32 %v2980_v25, 0.0  ;;  %v2981_v55 = vadd.f32 %v3808_v36, %v3582_v1  ;;  %v2953_v56 = vpop.f32.mrb[3].mxu0 }
 0xea3   : > { %v2982_v58 = vmax.f32 %v2978_v33, 0.0  ;;  %v2979_v59 = vadd.f32 %v3582_v1, %v2953_v56 }
 0xea4   : > { %v2988_v61 = vadd.f32 %v4429_v38, %v2984_v37  ;;  %v2985_v62 = vmax.f32 %v2981_v55, 0.0 }
 0xea5   : > { %v2986_v63 = vadd.f32 %v4437_v12, %v2982_v58  ;;  %v2983_v5 = vmax.f32 %v2979_v59, 0.0  ;;  %2513 = sbr.rel (!%p2511_p2) target bundleno = 3272 (0xcc8), region = 164 }
 0xea6   : > { %v2992_v6 = vmul.f32 %v2988_v61, %v4951_v13   ;;  %v2989_v7 = vadd.f32 %v4425_v16, %v2985_v62 }
 0xea7   : > { %v2990_v8 = vmul.f32 %v2986_v63, %v4937_v60   ;;  %v2987_v10 = vadd.f32 %v4433_v20, %v2983_v5 }
 0xea8   : > { %v2993_v39 = vmul.f32 %v2989_v7, %v4959_v27   ;;  %v5274_v38 = vmov %v2992_v6 }
 0xea9   : > { %v2991_v11 = vmul.f32 %v2987_v10, %v4942_v14   ;;  %v5276_v12 = vmov %v2990_v8  ;;  %v3588_v38 = vld [vmem:[%s5247_s17 + $0x1] ss:$0 sm:$0xff] (%p2511_p2) }
 0xeaa   : > { %v5273_v16 = vmov %v2993_v39  ;;  %v3000_v18 = vpack.c.bf16 (%p2511_p2), %v2993_v39, %v2992_v6 }
 0xeab   : > { %v5275_v20 = vmov %v2991_v11  ;;  %v2999_v12 = vpack.c.bf16 (%p2511_p2), %v2991_v11, %v2990_v8 }
 0xead   :  { %3813 = vmatprep.mubr.msk.bf16.mxu0 %vm106_vm0, %v2999_v12 }
 0xeae   :  { %3814 = vmatmul.mubr.msk.bf16.vlgmr.msra.gmra.mrb[0].mxu0 %vm106_vm0, %v3000_v18 }
 0xf81   :  { %v3815_v16 = vpop.f32.mrb[0].mxu0 }
 0xf82   :  { %v3070_v20 = vadd.f32 %v3815_v16, %v3588_v38  ;;  %v3061_v21 = vpop.f32.mrb[1].mxu0 }
 0xf83   :  { %v3062_v22 = vadd.f32 %v3588_v38, %v3061_v21  ;;  %v3816_v57 = vpop.f32.mrb[2].mxu0 }
 0xf84   :  { %v3078_v23 = vmul.f32 %v3070_v20, %v4951_v13  ;;  %v3073_v26 = vadd.f32 %v3816_v57, %v3588_v38  ;;  %v3064_v30 = vpop.f32.mrb[3].mxu0 }
 0xf85   :  { %v3076_v31 = vmul.f32 %v3062_v22, %v4937_v60  ;;  %v3065_v34 = vadd.f32 %v3588_v38, %v3064_v30 }
 0xf86   :  { %3595 = vst.msk [vmem:[%s5248_s18 + $0x50] sm:$0xff] %vm1699_vm1, %v3078_v23  ;;  %v3079_v35 = vmul.f32 %v3073_v26, %v4959_v27 }
 0xf87   :  { %3593 = vst.msk [vmem:[%s5248_s18 + $0x40] sm:$0xff] %vm1699_vm1, %v3076_v31  ;;  %v3077_v40 = vmul.f32 %v3065_v34, %v4942_v14 }
 0xf88   :  { %3596 = vst.msk [vmem:[%s5248_s18 + $0x58] sm:$0xff] %vm1699_vm1, %v3079_v35 }
 0xf89   :  { %3594 = vst.msk [vmem:[%s5248_s18 + $0x48] sm:$0xff] %vm1699_vm1, %v3077_v40 }

</bundles_post_ra>
